<compile_context>
chip_gen: v5e
topology: v5e:2x2
jax: 0.10.0
libtpu: 0.0.40
codegen_flags: <defaults>
</compile_context>

<pallas_src>
import functools

import jax
import jax.numpy as jnp
import numpy as np
from jax import lax
from jax.experimental import pallas as pl
from jax.experimental.pallas import tpu as pltpu


def _round_up(x, m):
    return (x + m - 1) // m * m


def _lstm_kernel(num_layers, seq_len, hidden_size, batch_pad, *refs):
    # refs: x_ref (T*Bp, D),
    #       [w_ih_l (D_l, 4H), w_hh_l (H, 4H), b_l (1, 4H)] * num_layers,
    #       w_fc (H, Cp), b_fc (1, Cp),
    #       out_ref (Bp, Cp),
    #       gx_ref (T*Bp, 4H) scratch, hseq_ref (T*Bp, H) scratch
    x_ref = refs[0]
    layer_refs = []
    idx = 1
    for _ in range(num_layers):
        layer_refs.append(refs[idx:idx + 3])
        idx += 3
    w_fc_ref, b_fc_ref, out_ref, gx_ref, hseq_ref = refs[idx:idx + 5]

    T, Bp, H = seq_len, batch_pad, hidden_size

    h_last = None
    for l in range(num_layers):
        w_ih_ref, w_hh_ref, b_ref = layer_refs[l]
        inp_seq = x_ref[...] if l == 0 else hseq_ref[...]            # (T*Bp, D_l)

        # Hoisted input projection for all T timesteps at once: one big MXU matmul
        # (fills sublanes) instead of T tiny matmuls on the serial critical path.
        gx_ref[...] = (jnp.dot(inp_seq, w_ih_ref[...],
                               preferred_element_type=jnp.float32)
                       + b_ref[...])                                 # (T*Bp, 4H)

        w_hh = w_hh_ref[...]                                         # (H, 4H), vreg-resident
        write_seq = l < num_layers - 1

        def step(t, carry, w_hh=w_hh, write_seq=write_seq):
            h, c = carry
            row = pl.multiple_of(t * Bp, Bp)                         # sublane-aligned slice
            gates = gx_ref[pl.ds(row, Bp), :] + jnp.dot(
                h, w_hh, preferred_element_type=jnp.float32)         # (Bp, 4H)
            sig = jax.nn.sigmoid(gates)                              # one whole-vreg EUP op
            i_g = sig[:, 0:H]
            f_g = sig[:, H:2 * H]
            o_g = sig[:, 3 * H:4 * H]
            g_g = jnp.tanh(gates[:, 2 * H:3 * H])
            c_new = f_g * c + i_g * g_g
            h_new = o_g * jnp.tanh(c_new)
            if write_seq:
                hseq_ref[pl.ds(row, Bp), :] = h_new                  # feeds next layer
            return h_new, c_new

        h0 = jnp.zeros((Bp, H), jnp.float32)
        c0 = jnp.zeros((Bp, H), jnp.float32)
        h_last, _ = lax.fori_loop(0, T, step, (h0, c0), unroll=True)

    # fc on the last timestep's top-layer hidden state (== out[:, -1, :] in PyTorch)
    out_ref[...] = (jnp.dot(h_last, w_fc_ref[...],
                            preferred_element_type=jnp.float32) + b_fc_ref[...])


def prepare_params(layers, w_fc, b_fc, *, hidden_size, num_classes):
    """One-time parameter prep: transpose weights, merge biases, pad fc to 128 lanes."""
    H = hidden_size
    Cp = _round_up(num_classes, 128)
    prepped = []
    for (w_ih, w_hh, b_ih, b_hh) in layers:
        prepped.append((
            jnp.asarray(w_ih, jnp.float32).T,                        # (D_l, 4H)
            jnp.asarray(w_hh, jnp.float32).T,                        # (H, 4H)
            (b_ih + b_hh).astype(jnp.float32).reshape(1, 4 * H),     # merged bias
        ))
    w_fc_p = jnp.zeros((H, Cp), jnp.float32).at[:, :num_classes].set(
        jnp.asarray(w_fc, jnp.float32).T)
    b_fc_p = jnp.zeros((1, Cp), jnp.float32).at[:, :num_classes].set(
        jnp.asarray(b_fc, jnp.float32).reshape(1, -1))
    return prepped, w_fc_p, b_fc_p


@functools.partial(jax.jit, static_argnames=("num_layers", "hidden_size", "num_classes"))
def lstm_forward(x, prepped_layers, w_fc_p, b_fc_p, *,
                 num_layers, hidden_size, num_classes):
    """x: (B, T, input_size) f32 -> (B, num_classes) f32 (matches the PyTorch module)."""
    B, T, D = x.shape
    Bp = _round_up(max(B, 8), 8)                                     # pad batch to sublanes
    Cp = w_fc_p.shape[1]

    x_tm = jnp.transpose(x, (1, 0, 2))                               # (T, B, D) time-major
    if Bp != B:
        x_tm = jnp.pad(x_tm, ((0, 0), (0, Bp - B), (0, 0)))
    x_flat = x_tm.reshape(T * Bp, D)                                 # flat for batched proj

    kernel_args = [x_flat]
    for (w_ih, w_hh, b) in prepped_layers:
        kernel_args += [w_ih, w_hh, b]
    kernel_args += [w_fc_p, b_fc_p]

    vmem = pl.BlockSpec(memory_space=pltpu.MemorySpace.VMEM)
    kernel = functools.partial(_lstm_kernel, num_layers, T, hidden_size, Bp)

    out_p = pl.pallas_call(
        kernel,
        out_shape=jax.ShapeDtypeStruct((Bp, Cp), jnp.float32),
        in_specs=[vmem] * len(kernel_args),
        out_specs=vmem,
        scratch_shapes=[
            pltpu.VMEM((T * Bp, 4 * hidden_size), jnp.float32),      # hoisted projections
            pltpu.VMEM((T * Bp, hidden_size), jnp.float32),          # inter-layer h sequence
        ],
    )(*kernel_args)
    # TODO(synk): for large T/B/hidden (esp. v7x 64 MiB VMEM), tile x / hseq along T with a
    # grid instead of keeping everything VMEM-resident.
    return out_p[:B, :num_classes]


def lstm_ref(x, layers, w_fc, b_fc, *, num_layers, hidden_size):
    """Pure-JAX reference mirroring nn.LSTM(batch_first=True) + nn.Linear."""
    B, T, _ = x.shape
    H = hidden_size
    h = [jnp.zeros((B, H), jnp.float32) for _ in range(num_layers)]
    c = [jnp.zeros((B, H), jnp.float32) for _ in range(num_layers)]
    for t in range(T):
        inp = x[:, t, :]
        for l in range(num_layers):
            w_ih, w_hh, b_ih, b_hh = layers[l]
            gates = inp @ w_ih.T + h[l] @ w_hh.T + b_ih + b_hh
            i = jax.nn.sigmoid(gates[:, :H])
            f = jax.nn.sigmoid(gates[:, H:2 * H])
            g = jnp.tanh(gates[:, 2 * H:3 * H])
            o = jax.nn.sigmoid(gates[:, 3 * H:])
            c[l] = f * c[l] + i * g
            h[l] = o * jnp.tanh(c[l])
            inp = h[l]
    return h[-1] @ w_fc.T + b_fc


if __name__ == "__main__":
    # Small shapes consistent with the module's forward.
    B, T = 2, 8
    input_size, hidden_size, num_layers, num_classes = 16, 32, 2, 10

    key = jax.random.PRNGKey(0)
    ks = iter(jax.random.split(key, 4 * num_layers + 3))
    bound = 1.0 / float(np.sqrt(hidden_size))   # PyTorch default init range

    layers = []
    for l in range(num_layers):
        in_l = input_size if l == 0 else hidden_size
        w_ih = jax.random.uniform(next(ks), (4 * hidden_size, in_l), jnp.float32, -bound, bound)
        w_hh = jax.random.uniform(next(ks), (4 * hidden_size, hidden_size), jnp.float32, -bound, bound)
        b_ih = jax.random.uniform(next(ks), (4 * hidden_size,), jnp.float32, -bound, bound)
        b_hh = jax.random.uniform(next(ks), (4 * hidden_size,), jnp.float32, -bound, bound)
        layers.append((w_ih, w_hh, b_ih, b_hh))

    w_fc = jax.random.uniform(next(ks), (num_classes, hidden_size), jnp.float32, -bound, bound)
    b_fc = jax.random.uniform(next(ks), (num_classes,), jnp.float32, -bound, bound)

    x = jax.random.normal(next(ks), (B, T, input_size), jnp.float32)

    # One-time parameter preparation (kept out of the per-call path).
    prepped_layers, w_fc_p, b_fc_p = prepare_params(
        layers, w_fc, b_fc, hidden_size=hidden_size, num_classes=num_classes)

    out = lstm_forward(x, prepped_layers, w_fc_p, b_fc_p,
                       num_layers=num_layers, hidden_size=hidden_size,
                       num_classes=num_classes)
    out = jax.block_until_ready(out)

    ref = lstm_ref(x, layers, w_fc, b_fc, num_layers=num_layers, hidden_size=hidden_size)
    np.testing.assert_allclose(np.asarray(out), np.asarray(ref), rtol=5e-4, atol=5e-4)

    assert out.shape == (B, num_classes)
    print("KERNEL_OK")
</pallas_src>

<mosaic_0001>
module attributes {stable_mosaic.version = 11 : i64} {
  func.func @_lstm_kernel(%arg0: memref<64x16xf32, #tpu.memory_space<vmem>>, %arg1: memref<16x128xf32, #tpu.memory_space<vmem>>, %arg2: memref<32x128xf32, #tpu.memory_space<vmem>>, %arg3: memref<1x128xf32, #tpu.memory_space<vmem>>, %arg4: memref<32x128xf32, #tpu.memory_space<vmem>>, %arg5: memref<32x128xf32, #tpu.memory_space<vmem>>, %arg6: memref<1x128xf32, #tpu.memory_space<vmem>>, %arg7: memref<32x128xf32, #tpu.memory_space<vmem>>, %arg8: memref<1x128xf32, #tpu.memory_space<vmem>>, %arg9: memref<8x128xf32, #tpu.memory_space<vmem>>, %arg10: memref<64x128xf32, #tpu.memory_space<vmem>>, %arg11: memref<64x32xf32, #tpu.memory_space<vmem>>) attributes {dimension_semantics = [], scalar_prefetch = 0 : i64, scratch_operands = 2 : i64, tpu.core_type = #tpu.core_type<tc>} {
    %c0 = arith.constant 0 : index
    %c0_0 = arith.constant 0 : index
    %0 = vector.load %arg0[%c0, %c0_0] : memref<64x16xf32, #tpu.memory_space<vmem>>, vector<64x16xf32>
    %c0_1 = arith.constant 0 : index
    %c0_2 = arith.constant 0 : index
    %1 = vector.load %arg1[%c0_1, %c0_2] : memref<16x128xf32, #tpu.memory_space<vmem>>, vector<16x128xf32>
    %cst = arith.constant dense<0.000000e+00> : vector<64x128xf32>
    %2 = tpu.matmul %0, %1, %cst {dimension_numbers = #tpu.dot_dimension_numbers<[1], [0], [0], [1], [0, 0, 1, 1], [], []>} : vector<64x16xf32>, vector<16x128xf32>, vector<64x128xf32> -> vector<64x128xf32>
    %c0_3 = arith.constant 0 : index
    %c0_4 = arith.constant 0 : index
    %3 = vector.load %arg3[%c0_3, %c0_4] : memref<1x128xf32, #tpu.memory_space<vmem>>, vector<1x128xf32>
    %4 = vector.broadcast %3 : vector<1x128xf32> to vector<64x128xf32>
    %5 = arith.addf %2, %4 : vector<64x128xf32>
    %c0_5 = arith.constant 0 : index
    %c0_6 = arith.constant 0 : index
    %6 = vector.load %arg10[%c0_5, %c0_6] : memref<64x128xf32, #tpu.memory_space<vmem>>, vector<64x128xf32>
    tpu.vector_store %arg10[%c0_5, %c0_6], %5 {strides = array<i32>} : memref<64x128xf32, #tpu.memory_space<vmem>>, vector<64x128xf32>,
    %c0_7 = arith.constant 0 : index
    %c0_8 = arith.constant 0 : index
    %7 = vector.load %arg2[%c0_7, %c0_8] : memref<32x128xf32, #tpu.memory_space<vmem>>, vector<32x128xf32>
    %cst_9 = arith.constant 0.000000e+00 : f32
    %8 = vector.broadcast %cst_9 : f32 to vector<8x32xf32>
    %cst_10 = arith.constant 0.000000e+00 : f32
    %9 = vector.broadcast %cst_10 : f32 to vector<8x32xf32>
    %c0_i32 = arith.constant 0 : i32
    %c8_i32 = arith.constant 8 : i32
    %10 = arith.muli %c0_i32, %c8_i32 : i32
    %11 = tpu.assume_multiple %10, 8 : i32
    %12 = arith.index_cast %11 : i32 to index
    %c0_11 = arith.constant 0 : index
    %13 = vector.load %arg10[%12, %c0_11] : memref<64x128xf32, #tpu.memory_space<vmem>>, vector<8x128xf32>
    %cst_12 = arith.constant dense<0.000000e+00> : vector<8x128xf32>
    %14 = tpu.matmul %8, %7, %cst_12 {dimension_numbers = #tpu.dot_dimension_numbers<[1], [0], [0], [1], [0, 0, 1, 1], [], []>} : vector<8x32xf32>, vector<32x128xf32>, vector<8x128xf32> -> vector<8x128xf32>
    %15 = arith.addf %13, %14 : vector<8x128xf32>
    %16 = arith.negf %15 : vector<8x128xf32>
    %17 = math.exp %16 : vector<8x128xf32>
    %cst_13 = arith.constant 1.000000e+00 : f32
    %18 = vector.broadcast %cst_13 : f32 to vector<8x128xf32>
    %19 = arith.addf %18, %17 : vector<8x128xf32>
    %20 = arith.divf %18, %19 : vector<8x128xf32>
    %21 = vector.extract_strided_slice %20 {offsets = [0, 0], sizes = [8, 32], strides = [1, 1]} : vector<8x128xf32> to vector<8x32xf32>
    %22 = vector.extract_strided_slice %20 {offsets = [0, 32], sizes = [8, 32], strides = [1, 1]} : vector<8x128xf32> to vector<8x32xf32>
    %23 = vector.extract_strided_slice %20 {offsets = [0, 96], sizes = [8, 32], strides = [1, 1]} : vector<8x128xf32> to vector<8x32xf32>
    %24 = vector.extract_strided_slice %15 {offsets = [0, 64], sizes = [8, 32], strides = [1, 1]} : vector<8x128xf32> to vector<8x32xf32>
    %25 = math.tanh %24 : vector<8x32xf32>
    %26 = arith.mulf %22, %9 : vector<8x32xf32>
    %27 = arith.mulf %21, %25 : vector<8x32xf32>
    %28 = arith.addf %26, %27 : vector<8x32xf32>
    %29 = math.tanh %28 : vector<8x32xf32>
    %30 = arith.mulf %23, %29 : vector<8x32xf32>
    %31 = arith.index_cast %11 : i32 to index
    %c0_14 = arith.constant 0 : index
    %32 = vector.load %arg11[%31, %c0_14] : memref<64x32xf32, #tpu.memory_space<vmem>>, vector<8x32xf32>
    tpu.vector_store %arg11[%31, %c0_14], %30 {strides = array<i32>} : memref<64x32xf32, #tpu.memory_space<vmem>>, vector<8x32xf32>,
    %c1_i32 = arith.constant 1 : i32
    %c8_i32_15 = arith.constant 8 : i32
    %33 = arith.muli %c1_i32, %c8_i32_15 : i32
    %34 = tpu.assume_multiple %33, 8 : i32
    %35 = arith.index_cast %34 : i32 to index
    %c0_16 = arith.constant 0 : index
    %36 = vector.load %arg10[%35, %c0_16] : memref<64x128xf32, #tpu.memory_space<vmem>>, vector<8x128xf32>
    %cst_17 = arith.constant dense<0.000000e+00> : vector<8x128xf32>
    %37 = tpu.matmul %30, %7, %cst_17 {dimension_numbers = #tpu.dot_dimension_numbers<[1], [0], [0], [1], [0, 0, 1, 1], [], []>} : vector<8x32xf32>, vector<32x128xf32>, vector<8x128xf32> -> vector<8x128xf32>
    %38 = arith.addf %36, %37 : vector<8x128xf32>
    %39 = arith.negf %38 : vector<8x128xf32>
    %40 = math.exp %39 : vector<8x128xf32>
    %cst_18 = arith.constant 1.000000e+00 : f32
    %41 = vector.broadcast %cst_18 : f32 to vector<8x128xf32>
    %42 = arith.addf %41, %40 : vector<8x128xf32>
    %43 = arith.divf %41, %42 : vector<8x128xf32>
    %44 = vector.extract_strided_slice %43 {offsets = [0, 0], sizes = [8, 32], strides = [1, 1]} : vector<8x128xf32> to vector<8x32xf32>
    %45 = vector.extract_strided_slice %43 {offsets = [0, 32], sizes = [8, 32], strides = [1, 1]} : vector<8x128xf32> to vector<8x32xf32>
    %46 = vector.extract_strided_slice %43 {offsets = [0, 96], sizes = [8, 32], strides = [1, 1]} : vector<8x128xf32> to vector<8x32xf32>
    %47 = vector.extract_strided_slice %38 {offsets = [0, 64], sizes = [8, 32], strides = [1, 1]} : vector<8x128xf32> to vector<8x32xf32>
    %48 = math.tanh %47 : vector<8x32xf32>
    %49 = arith.mulf %45, %28 : vector<8x32xf32>
    %50 = arith.mulf %44, %48 : vector<8x32xf32>
    %51 = arith.addf %49, %50 : vector<8x32xf32>
    %52 = math.tanh %51 : vector<8x32xf32>
    %53 = arith.mulf %46, %52 : vector<8x32xf32>
    %54 = arith.index_cast %34 : i32 to index
    %c0_19 = arith.constant 0 : index
    %55 = vector.load %arg11[%54, %c0_19] : memref<64x32xf32, #tpu.memory_space<vmem>>, vector<8x32xf32>
    tpu.vector_store %arg11[%54, %c0_19], %53 {strides = array<i32>} : memref<64x32xf32, #tpu.memory_space<vmem>>, vector<8x32xf32>,
    %c2_i32 = arith.constant 2 : i32
    %c8_i32_20 = arith.constant 8 : i32
    %56 = arith.muli %c2_i32, %c8_i32_20 : i32
    %57 = tpu.assume_multiple %56, 8 : i32
    %58 = arith.index_cast %57 : i32 to index
    %c0_21 = arith.constant 0 : index
    %59 = vector.load %arg10[%58, %c0_21] : memref<64x128xf32, #tpu.memory_space<vmem>>, vector<8x128xf32>
    %cst_22 = arith.constant dense<0.000000e+00> : vector<8x128xf32>
    %60 = tpu.matmul %53, %7, %cst_22 {dimension_numbers = #tpu.dot_dimension_numbers<[1], [0], [0], [1], [0, 0, 1, 1], [], []>} : vector<8x32xf32>, vector<32x128xf32>, vector<8x128xf32> -> vector<8x128xf32>
    %61 = arith.addf %59, %60 : vector<8x128xf32>
    %62 = arith.negf %61 : vector<8x128xf32>
    %63 = math.exp %62 : vector<8x128xf32>
    %cst_23 = arith.constant 1.000000e+00 : f32
    %64 = vector.broadcast %cst_23 : f32 to vector<8x128xf32>
    %65 = arith.addf %64, %63 : vector<8x128xf32>
    %66 = arith.divf %64, %65 : vector<8x128xf32>
    %67 = vector.extract_strided_slice %66 {offsets = [0, 0], sizes = [8, 32], strides = [1, 1]} : vector<8x128xf32> to vector<8x32xf32>
    %68 = vector.extract_strided_slice %66 {offsets = [0, 32], sizes = [8, 32], strides = [1, 1]} : vector<8x128xf32> to vector<8x32xf32>
    %69 = vector.extract_strided_slice %66 {offsets = [0, 96], sizes = [8, 32], strides = [1, 1]} : vector<8x128xf32> to vector<8x32xf32>
    %70 = vector.extract_strided_slice %61 {offsets = [0, 64], sizes = [8, 32], strides = [1, 1]} : vector<8x128xf32> to vector<8x32xf32>
    %71 = math.tanh %70 : vector<8x32xf32>
    %72 = arith.mulf %68, %51 : vector<8x32xf32>
    %73 = arith.mulf %67, %71 : vector<8x32xf32>
    %74 = arith.addf %72, %73 : vector<8x32xf32>
    %75 = math.tanh %74 : vector<8x32xf32>
    %76 = arith.mulf %69, %75 : vector<8x32xf32>
    %77 = arith.index_cast %57 : i32 to index
    %c0_24 = arith.constant 0 : index
    %78 = vector.load %arg11[%77, %c0_24] : memref<64x32xf32, #tpu.memory_space<vmem>>, vector<8x32xf32>
    tpu.vector_store %arg11[%77, %c0_24], %76 {strides = array<i32>} : memref<64x32xf32, #tpu.memory_space<vmem>>, vector<8x32xf32>,
    %c3_i32 = arith.constant 3 : i32
    %c8_i32_25 = arith.constant 8 : i32
    %79 = arith.muli %c3_i32, %c8_i32_25 : i32
    %80 = tpu.assume_multiple %79, 8 : i32
    %81 = arith.index_cast %80 : i32 to index
    %c0_26 = arith.constant 0 : index
    %82 = vector.load %arg10[%81, %c0_26] : memref<64x128xf32, #tpu.memory_space<vmem>>, vector<8x128xf32>
    %cst_27 = arith.constant dense<0.000000e+00> : vector<8x128xf32>
    %83 = tpu.matmul %76, %7, %cst_27 {dimension_numbers = #tpu.dot_dimension_numbers<[1], [0], [0], [1], [0, 0, 1, 1], [], []>} : vector<8x32xf32>, vector<32x128xf32>, vector<8x128xf32> -> vector<8x128xf32>
    %84 = arith.addf %82, %83 : vector<8x128xf32>
    %85 = arith.negf %84 : vector<8x128xf32>
    %86 = math.exp %85 : vector<8x128xf32>
    %cst_28 = arith.constant 1.000000e+00 : f32
    %87 = vector.broadcast %cst_28 : f32 to vector<8x128xf32>
    %88 = arith.addf %87, %86 : vector<8x128xf32>
    %89 = arith.divf %87, %88 : vector<8x128xf32>
    %90 = vector.extract_strided_slice %89 {offsets = [0, 0], sizes = [8, 32], strides = [1, 1]} : vector<8x128xf32> to vector<8x32xf32>
    %91 = vector.extract_strided_slice %89 {offsets = [0, 32], sizes = [8, 32], strides = [1, 1]} : vector<8x128xf32> to vector<8x32xf32>
    %92 = vector.extract_strided_slice %89 {offsets = [0, 96], sizes = [8, 32], strides = [1, 1]} : vector<8x128xf32> to vector<8x32xf32>
    %93 = vector.extract_strided_slice %84 {offsets = [0, 64], sizes = [8, 32], strides = [1, 1]} : vector<8x128xf32> to vector<8x32xf32>
    %94 = math.tanh %93 : vector<8x32xf32>
    %95 = arith.mulf %91, %74 : vector<8x32xf32>
    %96 = arith.mulf %90, %94 : vector<8x32xf32>
    %97 = arith.addf %95, %96 : vector<8x32xf32>
    %98 = math.tanh %97 : vector<8x32xf32>
    %99 = arith.mulf %92, %98 : vector<8x32xf32>
    %100 = arith.index_cast %80 : i32 to index
    %c0_29 = arith.constant 0 : index
    %101 = vector.load %arg11[%100, %c0_29] : memref<64x32xf32, #tpu.memory_space<vmem>>, vector<8x32xf32>
    tpu.vector_store %arg11[%100, %c0_29], %99 {strides = array<i32>} : memref<64x32xf32, #tpu.memory_space<vmem>>, vector<8x32xf32>,
    %c4_i32 = arith.constant 4 : i32
    %c8_i32_30 = arith.constant 8 : i32
    %102 = arith.muli %c4_i32, %c8_i32_30 : i32
    %103 = tpu.assume_multiple %102, 8 : i32
    %104 = arith.index_cast %103 : i32 to index
    %c0_31 = arith.constant 0 : index
    %105 = vector.load %arg10[%104, %c0_31] : memref<64x128xf32, #tpu.memory_space<vmem>>, vector<8x128xf32>
    %cst_32 = arith.constant dense<0.000000e+00> : vector<8x128xf32>
    %106 = tpu.matmul %99, %7, %cst_32 {dimension_numbers = #tpu.dot_dimension_numbers<[1], [0], [0], [1], [0, 0, 1, 1], [], []>} : vector<8x32xf32>, vector<32x128xf32>, vector<8x128xf32> -> vector<8x128xf32>
    %107 = arith.addf %105, %106 : vector<8x128xf32>
    %108 = arith.negf %107 : vector<8x128xf32>
    %109 = math.exp %108 : vector<8x128xf32>
    %cst_33 = arith.constant 1.000000e+00 : f32
    %110 = vector.broadcast %cst_33 : f32 to vector<8x128xf32>
    %111 = arith.addf %110, %109 : vector<8x128xf32>
    %112 = arith.divf %110, %111 : vector<8x128xf32>
    %113 = vector.extract_strided_slice %112 {offsets = [0, 0], sizes = [8, 32], strides = [1, 1]} : vector<8x128xf32> to vector<8x32xf32>
    %114 = vector.extract_strided_slice %112 {offsets = [0, 32], sizes = [8, 32], strides = [1, 1]} : vector<8x128xf32> to vector<8x32xf32>
    %115 = vector.extract_strided_slice %112 {offsets = [0, 96], sizes = [8, 32], strides = [1, 1]} : vector<8x128xf32> to vector<8x32xf32>
    %116 = vector.extract_strided_slice %107 {offsets = [0, 64], sizes = [8, 32], strides = [1, 1]} : vector<8x128xf32> to vector<8x32xf32>
    %117 = math.tanh %116 : vector<8x32xf32>
    %118 = arith.mulf %114, %97 : vector<8x32xf32>
    %119 = arith.mulf %113, %117 : vector<8x32xf32>
    %120 = arith.addf %118, %119 : vector<8x32xf32>
    %121 = math.tanh %120 : vector<8x32xf32>
    %122 = arith.mulf %115, %121 : vector<8x32xf32>
    %123 = arith.index_cast %103 : i32 to index
    %c0_34 = arith.constant 0 : index
    %124 = vector.load %arg11[%123, %c0_34] : memref<64x32xf32, #tpu.memory_space<vmem>>, vector<8x32xf32>
    tpu.vector_store %arg11[%123, %c0_34], %122 {strides = array<i32>} : memref<64x32xf32, #tpu.memory_space<vmem>>, vector<8x32xf32>,
    %c5_i32 = arith.constant 5 : i32
    %c8_i32_35 = arith.constant 8 : i32
    %125 = arith.muli %c5_i32, %c8_i32_35 : i32
    %126 = tpu.assume_multiple %125, 8 : i32
    %127 = arith.index_cast %126 : i32 to index
    %c0_36 = arith.constant 0 : index
    %128 = vector.load %arg10[%127, %c0_36] : memref<64x128xf32, #tpu.memory_space<vmem>>, vector<8x128xf32>
    %cst_37 = arith.constant dense<0.000000e+00> : vector<8x128xf32>
    %129 = tpu.matmul %122, %7, %cst_37 {dimension_numbers = #tpu.dot_dimension_numbers<[1], [0], [0], [1], [0, 0, 1, 1], [], []>} : vector<8x32xf32>, vector<32x128xf32>, vector<8x128xf32> -> vector<8x128xf32>
    %130 = arith.addf %128, %129 : vector<8x128xf32>
    %131 = arith.negf %130 : vector<8x128xf32>
    %132 = math.exp %131 : vector<8x128xf32>
    %cst_38 = arith.constant 1.000000e+00 : f32
    %133 = vector.broadcast %cst_38 : f32 to vector<8x128xf32>
    %134 = arith.addf %133, %132 : vector<8x128xf32>
    %135 = arith.divf %133, %134 : vector<8x128xf32>
    %136 = vector.extract_strided_slice %135 {offsets = [0, 0], sizes = [8, 32], strides = [1, 1]} : vector<8x128xf32> to vector<8x32xf32>
    %137 = vector.extract_strided_slice %135 {offsets = [0, 32], sizes = [8, 32], strides = [1, 1]} : vector<8x128xf32> to vector<8x32xf32>
    %138 = vector.extract_strided_slice %135 {offsets = [0, 96], sizes = [8, 32], strides = [1, 1]} : vector<8x128xf32> to vector<8x32xf32>
    %139 = vector.extract_strided_slice %130 {offsets = [0, 64], sizes = [8, 32], strides = [1, 1]} : vector<8x128xf32> to vector<8x32xf32>
    %140 = math.tanh %139 : vector<8x32xf32>
    %141 = arith.mulf %137, %120 : vector<8x32xf32>
    %142 = arith.mulf %136, %140 : vector<8x32xf32>
    %143 = arith.addf %141, %142 : vector<8x32xf32>
    %144 = math.tanh %143 : vector<8x32xf32>
    %145 = arith.mulf %138, %144 : vector<8x32xf32>
    %146 = arith.index_cast %126 : i32 to index
    %c0_39 = arith.constant 0 : index
    %147 = vector.load %arg11[%146, %c0_39] : memref<64x32xf32, #tpu.memory_space<vmem>>, vector<8x32xf32>
    tpu.vector_store %arg11[%146, %c0_39], %145 {strides = array<i32>} : memref<64x32xf32, #tpu.memory_space<vmem>>, vector<8x32xf32>,
    %c6_i32 = arith.constant 6 : i32
    %c8_i32_40 = arith.constant 8 : i32
    %148 = arith.muli %c6_i32, %c8_i32_40 : i32
    %149 = tpu.assume_multiple %148, 8 : i32
    %150 = arith.index_cast %149 : i32 to index
    %c0_41 = arith.constant 0 : index
    %151 = vector.load %arg10[%150, %c0_41] : memref<64x128xf32, #tpu.memory_space<vmem>>, vector<8x128xf32>
    %cst_42 = arith.constant dense<0.000000e+00> : vector<8x128xf32>
    %152 = tpu.matmul %145, %7, %cst_42 {dimension_numbers = #tpu.dot_dimension_numbers<[1], [0], [0], [1], [0, 0, 1, 1], [], []>} : vector<8x32xf32>, vector<32x128xf32>, vector<8x128xf32> -> vector<8x128xf32>
    %153 = arith.addf %151, %152 : vector<8x128xf32>
    %154 = arith.negf %153 : vector<8x128xf32>
    %155 = math.exp %154 : vector<8x128xf32>
    %cst_43 = arith.constant 1.000000e+00 : f32
    %156 = vector.broadcast %cst_43 : f32 to vector<8x128xf32>
    %157 = arith.addf %156, %155 : vector<8x128xf32>
    %158 = arith.divf %156, %157 : vector<8x128xf32>
    %159 = vector.extract_strided_slice %158 {offsets = [0, 0], sizes = [8, 32], strides = [1, 1]} : vector<8x128xf32> to vector<8x32xf32>
    %160 = vector.extract_strided_slice %158 {offsets = [0, 32], sizes = [8, 32], strides = [1, 1]} : vector<8x128xf32> to vector<8x32xf32>
    %161 = vector.extract_strided_slice %158 {offsets = [0, 96], sizes = [8, 32], strides = [1, 1]} : vector<8x128xf32> to vector<8x32xf32>
    %162 = vector.extract_strided_slice %153 {offsets = [0, 64], sizes = [8, 32], strides = [1, 1]} : vector<8x128xf32> to vector<8x32xf32>
    %163 = math.tanh %162 : vector<8x32xf32>
    %164 = arith.mulf %160, %143 : vector<8x32xf32>
    %165 = arith.mulf %159, %163 : vector<8x32xf32>
    %166 = arith.addf %164, %165 : vector<8x32xf32>
    %167 = math.tanh %166 : vector<8x32xf32>
    %168 = arith.mulf %161, %167 : vector<8x32xf32>
    %169 = arith.index_cast %149 : i32 to index
    %c0_44 = arith.constant 0 : index
    %170 = vector.load %arg11[%169, %c0_44] : memref<64x32xf32, #tpu.memory_space<vmem>>, vector<8x32xf32>
    tpu.vector_store %arg11[%169, %c0_44], %168 {strides = array<i32>} : memref<64x32xf32, #tpu.memory_space<vmem>>, vector<8x32xf32>,
    %c7_i32 = arith.constant 7 : i32
    %c8_i32_45 = arith.constant 8 : i32
    %171 = arith.muli %c7_i32, %c8_i32_45 : i32
    %172 = tpu.assume_multiple %171, 8 : i32
    %173 = arith.index_cast %172 : i32 to index
    %c0_46 = arith.constant 0 : index
    %174 = vector.load %arg10[%173, %c0_46] : memref<64x128xf32, #tpu.memory_space<vmem>>, vector<8x128xf32>
    %cst_47 = arith.constant dense<0.000000e+00> : vector<8x128xf32>
    %175 = tpu.matmul %168, %7, %cst_47 {dimension_numbers = #tpu.dot_dimension_numbers<[1], [0], [0], [1], [0, 0, 1, 1], [], []>} : vector<8x32xf32>, vector<32x128xf32>, vector<8x128xf32> -> vector<8x128xf32>
    %176 = arith.addf %174, %175 : vector<8x128xf32>
    %177 = arith.negf %176 : vector<8x128xf32>
    %178 = math.exp %177 : vector<8x128xf32>
    %cst_48 = arith.constant 1.000000e+00 : f32
    %179 = vector.broadcast %cst_48 : f32 to vector<8x128xf32>
    %180 = arith.addf %179, %178 : vector<8x128xf32>
    %181 = arith.divf %179, %180 : vector<8x128xf32>
    %182 = vector.extract_strided_slice %181 {offsets = [0, 0], sizes = [8, 32], strides = [1, 1]} : vector<8x128xf32> to vector<8x32xf32>
    %183 = vector.extract_strided_slice %181 {offsets = [0, 32], sizes = [8, 32], strides = [1, 1]} : vector<8x128xf32> to vector<8x32xf32>
    %184 = vector.extract_strided_slice %181 {offsets = [0, 96], sizes = [8, 32], strides = [1, 1]} : vector<8x128xf32> to vector<8x32xf32>
    %185 = vector.extract_strided_slice %176 {offsets = [0, 64], sizes = [8, 32], strides = [1, 1]} : vector<8x128xf32> to vector<8x32xf32>
    %186 = math.tanh %185 : vector<8x32xf32>
    %187 = arith.mulf %183, %166 : vector<8x32xf32>
    %188 = arith.mulf %182, %186 : vector<8x32xf32>
    %189 = arith.addf %187, %188 : vector<8x32xf32>
    %190 = math.tanh %189 : vector<8x32xf32>
    %191 = arith.mulf %184, %190 : vector<8x32xf32>
    %192 = arith.index_cast %172 : i32 to index
    %c0_49 = arith.constant 0 : index
    %193 = vector.load %arg11[%192, %c0_49] : memref<64x32xf32, #tpu.memory_space<vmem>>, vector<8x32xf32>
    tpu.vector_store %arg11[%192, %c0_49], %191 {strides = array<i32>} : memref<64x32xf32, #tpu.memory_space<vmem>>, vector<8x32xf32>,
    %c8_i32_50 = arith.constant 8 : i32
    %c0_51 = arith.constant 0 : index
    %c0_52 = arith.constant 0 : index
    %194 = vector.load %arg11[%c0_51, %c0_52] : memref<64x32xf32, #tpu.memory_space<vmem>>, vector<64x32xf32>
    %c0_53 = arith.constant 0 : index
    %c0_54 = arith.constant 0 : index
    %195 = vector.load %arg4[%c0_53, %c0_54] : memref<32x128xf32, #tpu.memory_space<vmem>>, vector<32x128xf32>
    %cst_55 = arith.constant dense<0.000000e+00> : vector<64x128xf32>
    %196 = tpu.matmul %194, %195, %cst_55 {dimension_numbers = #tpu.dot_dimension_numbers<[1], [0], [0], [1], [0, 0, 1, 1], [], []>} : vector<64x32xf32>, vector<32x128xf32>, vector<64x128xf32> -> vector<64x128xf32>
    %c0_56 = arith.constant 0 : index
    %c0_57 = arith.constant 0 : index
    %197 = vector.load %arg6[%c0_56, %c0_57] : memref<1x128xf32, #tpu.memory_space<vmem>>, vector<1x128xf32>
    %198 = vector.broadcast %197 : vector<1x128xf32> to vector<64x128xf32>
    %199 = arith.addf %196, %198 : vector<64x128xf32>
    %c0_58 = arith.constant 0 : index
    %c0_59 = arith.constant 0 : index
    %200 = vector.load %arg10[%c0_58, %c0_59] : memref<64x128xf32, #tpu.memory_space<vmem>>, vector<64x128xf32>
    tpu.vector_store %arg10[%c0_58, %c0_59], %199 {strides = array<i32>} : memref<64x128xf32, #tpu.memory_space<vmem>>, vector<64x128xf32>,
    %c0_60 = arith.constant 0 : index
    %c0_61 = arith.constant 0 : index
    %201 = vector.load %arg5[%c0_60, %c0_61] : memref<32x128xf32, #tpu.memory_space<vmem>>, vector<32x128xf32>
    %cst_62 = arith.constant 0.000000e+00 : f32
    %202 = vector.broadcast %cst_62 : f32 to vector<8x32xf32>
    %cst_63 = arith.constant 0.000000e+00 : f32
    %203 = vector.broadcast %cst_63 : f32 to vector<8x32xf32>
    %c0_i32_64 = arith.constant 0 : i32
    %c8_i32_65 = arith.constant 8 : i32
    %204 = arith.muli %c0_i32_64, %c8_i32_65 : i32
    %205 = tpu.assume_multiple %204, 8 : i32
    %206 = arith.index_cast %205 : i32 to index
    %c0_66 = arith.constant 0 : index
    %207 = vector.load %arg10[%206, %c0_66] : memref<64x128xf32, #tpu.memory_space<vmem>>, vector<8x128xf32>
    %cst_67 = arith.constant dense<0.000000e+00> : vector<8x128xf32>
    %208 = tpu.matmul %202, %201, %cst_67 {dimension_numbers = #tpu.dot_dimension_numbers<[1], [0], [0], [1], [0, 0, 1, 1], [], []>} : vector<8x32xf32>, vector<32x128xf32>, vector<8x128xf32> -> vector<8x128xf32>
    %209 = arith.addf %207, %208 : vector<8x128xf32>
    %210 = arith.negf %209 : vector<8x128xf32>
    %211 = math.exp %210 : vector<8x128xf32>
    %cst_68 = arith.constant 1.000000e+00 : f32
    %212 = vector.broadcast %cst_68 : f32 to vector<8x128xf32>
    %213 = arith.addf %212, %211 : vector<8x128xf32>
    %214 = arith.divf %212, %213 : vector<8x128xf32>
    %215 = vector.extract_strided_slice %214 {offsets = [0, 0], sizes = [8, 32], strides = [1, 1]} : vector<8x128xf32> to vector<8x32xf32>
    %216 = vector.extract_strided_slice %214 {offsets = [0, 32], sizes = [8, 32], strides = [1, 1]} : vector<8x128xf32> to vector<8x32xf32>
    %217 = vector.extract_strided_slice %214 {offsets = [0, 96], sizes = [8, 32], strides = [1, 1]} : vector<8x128xf32> to vector<8x32xf32>
    %218 = vector.extract_strided_slice %209 {offsets = [0, 64], sizes = [8, 32], strides = [1, 1]} : vector<8x128xf32> to vector<8x32xf32>
    %219 = math.tanh %218 : vector<8x32xf32>
    %220 = arith.mulf %216, %203 : vector<8x32xf32>
    %221 = arith.mulf %215, %219 : vector<8x32xf32>
    %222 = arith.addf %220, %221 : vector<8x32xf32>
    %223 = math.tanh %222 : vector<8x32xf32>
    %224 = arith.mulf %217, %223 : vector<8x32xf32>
    %c1_i32_69 = arith.constant 1 : i32
    %c8_i32_70 = arith.constant 8 : i32
    %225 = arith.muli %c1_i32_69, %c8_i32_70 : i32
    %226 = tpu.assume_multiple %225, 8 : i32
    %227 = arith.index_cast %226 : i32 to index
    %c0_71 = arith.constant 0 : index
    %228 = vector.load %arg10[%227, %c0_71] : memref<64x128xf32, #tpu.memory_space<vmem>>, vector<8x128xf32>
    %cst_72 = arith.constant dense<0.000000e+00> : vector<8x128xf32>
    %229 = tpu.matmul %224, %201, %cst_72 {dimension_numbers = #tpu.dot_dimension_numbers<[1], [0], [0], [1], [0, 0, 1, 1], [], []>} : vector<8x32xf32>, vector<32x128xf32>, vector<8x128xf32> -> vector<8x128xf32>
    %230 = arith.addf %228, %229 : vector<8x128xf32>
    %231 = arith.negf %230 : vector<8x128xf32>
    %232 = math.exp %231 : vector<8x128xf32>
    %cst_73 = arith.constant 1.000000e+00 : f32
    %233 = vector.broadcast %cst_73 : f32 to vector<8x128xf32>
    %234 = arith.addf %233, %232 : vector<8x128xf32>
    %235 = arith.divf %233, %234 : vector<8x128xf32>
    %236 = vector.extract_strided_slice %235 {offsets = [0, 0], sizes = [8, 32], strides = [1, 1]} : vector<8x128xf32> to vector<8x32xf32>
    %237 = vector.extract_strided_slice %235 {offsets = [0, 32], sizes = [8, 32], strides = [1, 1]} : vector<8x128xf32> to vector<8x32xf32>
    %238 = vector.extract_strided_slice %235 {offsets = [0, 96], sizes = [8, 32], strides = [1, 1]} : vector<8x128xf32> to vector<8x32xf32>
    %239 = vector.extract_strided_slice %230 {offsets = [0, 64], sizes = [8, 32], strides = [1, 1]} : vector<8x128xf32> to vector<8x32xf32>
    %240 = math.tanh %239 : vector<8x32xf32>
    %241 = arith.mulf %237, %222 : vector<8x32xf32>
    %242 = arith.mulf %236, %240 : vector<8x32xf32>
    %243 = arith.addf %241, %242 : vector<8x32xf32>
    %244 = math.tanh %243 : vector<8x32xf32>
    %245 = arith.mulf %238, %244 : vector<8x32xf32>
    %c2_i32_74 = arith.constant 2 : i32
    %c8_i32_75 = arith.constant 8 : i32
    %246 = arith.muli %c2_i32_74, %c8_i32_75 : i32
    %247 = tpu.assume_multiple %246, 8 : i32
    %248 = arith.index_cast %247 : i32 to index
    %c0_76 = arith.constant 0 : index
    %249 = vector.load %arg10[%248, %c0_76] : memref<64x128xf32, #tpu.memory_space<vmem>>, vector<8x128xf32>
    %cst_77 = arith.constant dense<0.000000e+00> : vector<8x128xf32>
    %250 = tpu.matmul %245, %201, %cst_77 {dimension_numbers = #tpu.dot_dimension_numbers<[1], [0], [0], [1], [0, 0, 1, 1], [], []>} : vector<8x32xf32>, vector<32x128xf32>, vector<8x128xf32> -> vector<8x128xf32>
    %251 = arith.addf %249, %250 : vector<8x128xf32>
    %252 = arith.negf %251 : vector<8x128xf32>
    %253 = math.exp %252 : vector<8x128xf32>
    %cst_78 = arith.constant 1.000000e+00 : f32
    %254 = vector.broadcast %cst_78 : f32 to vector<8x128xf32>
    %255 = arith.addf %254, %253 : vector<8x128xf32>
    %256 = arith.divf %254, %255 : vector<8x128xf32>
    %257 = vector.extract_strided_slice %256 {offsets = [0, 0], sizes = [8, 32], strides = [1, 1]} : vector<8x128xf32> to vector<8x32xf32>
    %258 = vector.extract_strided_slice %256 {offsets = [0, 32], sizes = [8, 32], strides = [1, 1]} : vector<8x128xf32> to vector<8x32xf32>
    %259 = vector.extract_strided_slice %256 {offsets = [0, 96], sizes = [8, 32], strides = [1, 1]} : vector<8x128xf32> to vector<8x32xf32>
    %260 = vector.extract_strided_slice %251 {offsets = [0, 64], sizes = [8, 32], strides = [1, 1]} : vector<8x128xf32> to vector<8x32xf32>
    %261 = math.tanh %260 : vector<8x32xf32>
    %262 = arith.mulf %258, %243 : vector<8x32xf32>
    %263 = arith.mulf %257, %261 : vector<8x32xf32>
    %264 = arith.addf %262, %263 : vector<8x32xf32>
    %265 = math.tanh %264 : vector<8x32xf32>
    %266 = arith.mulf %259, %265 : vector<8x32xf32>
    %c3_i32_79 = arith.constant 3 : i32
    %c8_i32_80 = arith.constant 8 : i32
    %267 = arith.muli %c3_i32_79, %c8_i32_80 : i32
    %268 = tpu.assume_multiple %267, 8 : i32
    %269 = arith.index_cast %268 : i32 to index
    %c0_81 = arith.constant 0 : index
    %270 = vector.load %arg10[%269, %c0_81] : memref<64x128xf32, #tpu.memory_space<vmem>>, vector<8x128xf32>
    %cst_82 = arith.constant dense<0.000000e+00> : vector<8x128xf32>
    %271 = tpu.matmul %266, %201, %cst_82 {dimension_numbers = #tpu.dot_dimension_numbers<[1], [0], [0], [1], [0, 0, 1, 1], [], []>} : vector<8x32xf32>, vector<32x128xf32>, vector<8x128xf32> -> vector<8x128xf32>
    %272 = arith.addf %270, %271 : vector<8x128xf32>
    %273 = arith.negf %272 : vector<8x128xf32>
    %274 = math.exp %273 : vector<8x128xf32>
    %cst_83 = arith.constant 1.000000e+00 : f32
    %275 = vector.broadcast %cst_83 : f32 to vector<8x128xf32>
    %276 = arith.addf %275, %274 : vector<8x128xf32>
    %277 = arith.divf %275, %276 : vector<8x128xf32>
    %278 = vector.extract_strided_slice %277 {offsets = [0, 0], sizes = [8, 32], strides = [1, 1]} : vector<8x128xf32> to vector<8x32xf32>
    %279 = vector.extract_strided_slice %277 {offsets = [0, 32], sizes = [8, 32], strides = [1, 1]} : vector<8x128xf32> to vector<8x32xf32>
    %280 = vector.extract_strided_slice %277 {offsets = [0, 96], sizes = [8, 32], strides = [1, 1]} : vector<8x128xf32> to vector<8x32xf32>
    %281 = vector.extract_strided_slice %272 {offsets = [0, 64], sizes = [8, 32], strides = [1, 1]} : vector<8x128xf32> to vector<8x32xf32>
    %282 = math.tanh %281 : vector<8x32xf32>
    %283 = arith.mulf %279, %264 : vector<8x32xf32>
    %284 = arith.mulf %278, %282 : vector<8x32xf32>
    %285 = arith.addf %283, %284 : vector<8x32xf32>
    %286 = math.tanh %285 : vector<8x32xf32>
    %287 = arith.mulf %280, %286 : vector<8x32xf32>
    %c4_i32_84 = arith.constant 4 : i32
    %c8_i32_85 = arith.constant 8 : i32
    %288 = arith.muli %c4_i32_84, %c8_i32_85 : i32
    %289 = tpu.assume_multiple %288, 8 : i32
    %290 = arith.index_cast %289 : i32 to index
    %c0_86 = arith.constant 0 : index
    %291 = vector.load %arg10[%290, %c0_86] : memref<64x128xf32, #tpu.memory_space<vmem>>, vector<8x128xf32>
    %cst_87 = arith.constant dense<0.000000e+00> : vector<8x128xf32>
    %292 = tpu.matmul %287, %201, %cst_87 {dimension_numbers = #tpu.dot_dimension_numbers<[1], [0], [0], [1], [0, 0, 1, 1], [], []>} : vector<8x32xf32>, vector<32x128xf32>, vector<8x128xf32> -> vector<8x128xf32>
    %293 = arith.addf %291, %292 : vector<8x128xf32>
    %294 = arith.negf %293 : vector<8x128xf32>
    %295 = math.exp %294 : vector<8x128xf32>
    %cst_88 = arith.constant 1.000000e+00 : f32
    %296 = vector.broadcast %cst_88 : f32 to vector<8x128xf32>
    %297 = arith.addf %296, %295 : vector<8x128xf32>
    %298 = arith.divf %296, %297 : vector<8x128xf32>
    %299 = vector.extract_strided_slice %298 {offsets = [0, 0], sizes = [8, 32], strides = [1, 1]} : vector<8x128xf32> to vector<8x32xf32>
    %300 = vector.extract_strided_slice %298 {offsets = [0, 32], sizes = [8, 32], strides = [1, 1]} : vector<8x128xf32> to vector<8x32xf32>
    %301 = vector.extract_strided_slice %298 {offsets = [0, 96], sizes = [8, 32], strides = [1, 1]} : vector<8x128xf32> to vector<8x32xf32>
    %302 = vector.extract_strided_slice %293 {offsets = [0, 64], sizes = [8, 32], strides = [1, 1]} : vector<8x128xf32> to vector<8x32xf32>
    %303 = math.tanh %302 : vector<8x32xf32>
    %304 = arith.mulf %300, %285 : vector<8x32xf32>
    %305 = arith.mulf %299, %303 : vector<8x32xf32>
    %306 = arith.addf %304, %305 : vector<8x32xf32>
    %307 = math.tanh %306 : vector<8x32xf32>
    %308 = arith.mulf %301, %307 : vector<8x32xf32>
    %c5_i32_89 = arith.constant 5 : i32
    %c8_i32_90 = arith.constant 8 : i32
    %309 = arith.muli %c5_i32_89, %c8_i32_90 : i32
    %310 = tpu.assume_multiple %309, 8 : i32
    %311 = arith.index_cast %310 : i32 to index
    %c0_91 = arith.constant 0 : index
    %312 = vector.load %arg10[%311, %c0_91] : memref<64x128xf32, #tpu.memory_space<vmem>>, vector<8x128xf32>
    %cst_92 = arith.constant dense<0.000000e+00> : vector<8x128xf32>
    %313 = tpu.matmul %308, %201, %cst_92 {dimension_numbers = #tpu.dot_dimension_numbers<[1], [0], [0], [1], [0, 0, 1, 1], [], []>} : vector<8x32xf32>, vector<32x128xf32>, vector<8x128xf32> -> vector<8x128xf32>
    %314 = arith.addf %312, %313 : vector<8x128xf32>
    %315 = arith.negf %314 : vector<8x128xf32>
    %316 = math.exp %315 : vector<8x128xf32>
    %cst_93 = arith.constant 1.000000e+00 : f32
    %317 = vector.broadcast %cst_93 : f32 to vector<8x128xf32>
    %318 = arith.addf %317, %316 : vector<8x128xf32>
    %319 = arith.divf %317, %318 : vector<8x128xf32>
    %320 = vector.extract_strided_slice %319 {offsets = [0, 0], sizes = [8, 32], strides = [1, 1]} : vector<8x128xf32> to vector<8x32xf32>
    %321 = vector.extract_strided_slice %319 {offsets = [0, 32], sizes = [8, 32], strides = [1, 1]} : vector<8x128xf32> to vector<8x32xf32>
    %322 = vector.extract_strided_slice %319 {offsets = [0, 96], sizes = [8, 32], strides = [1, 1]} : vector<8x128xf32> to vector<8x32xf32>
    %323 = vector.extract_strided_slice %314 {offsets = [0, 64], sizes = [8, 32], strides = [1, 1]} : vector<8x128xf32> to vector<8x32xf32>
    %324 = math.tanh %323 : vector<8x32xf32>
    %325 = arith.mulf %321, %306 : vector<8x32xf32>
    %326 = arith.mulf %320, %324 : vector<8x32xf32>
    %327 = arith.addf %325, %326 : vector<8x32xf32>
    %328 = math.tanh %327 : vector<8x32xf32>
    %329 = arith.mulf %322, %328 : vector<8x32xf32>
    %c6_i32_94 = arith.constant 6 : i32
    %c8_i32_95 = arith.constant 8 : i32
    %330 = arith.muli %c6_i32_94, %c8_i32_95 : i32
    %331 = tpu.assume_multiple %330, 8 : i32
    %332 = arith.index_cast %331 : i32 to index
    %c0_96 = arith.constant 0 : index
    %333 = vector.load %arg10[%332, %c0_96] : memref<64x128xf32, #tpu.memory_space<vmem>>, vector<8x128xf32>
    %cst_97 = arith.constant dense<0.000000e+00> : vector<8x128xf32>
    %334 = tpu.matmul %329, %201, %cst_97 {dimension_numbers = #tpu.dot_dimension_numbers<[1], [0], [0], [1], [0, 0, 1, 1], [], []>} : vector<8x32xf32>, vector<32x128xf32>, vector<8x128xf32> -> vector<8x128xf32>
    %335 = arith.addf %333, %334 : vector<8x128xf32>
    %336 = arith.negf %335 : vector<8x128xf32>
    %337 = math.exp %336 : vector<8x128xf32>
    %cst_98 = arith.constant 1.000000e+00 : f32
    %338 = vector.broadcast %cst_98 : f32 to vector<8x128xf32>
    %339 = arith.addf %338, %337 : vector<8x128xf32>
    %340 = arith.divf %338, %339 : vector<8x128xf32>
    %341 = vector.extract_strided_slice %340 {offsets = [0, 0], sizes = [8, 32], strides = [1, 1]} : vector<8x128xf32> to vector<8x32xf32>
    %342 = vector.extract_strided_slice %340 {offsets = [0, 32], sizes = [8, 32], strides = [1, 1]} : vector<8x128xf32> to vector<8x32xf32>
    %343 = vector.extract_strided_slice %340 {offsets = [0, 96], sizes = [8, 32], strides = [1, 1]} : vector<8x128xf32> to vector<8x32xf32>
    %344 = vector.extract_strided_slice %335 {offsets = [0, 64], sizes = [8, 32], strides = [1, 1]} : vector<8x128xf32> to vector<8x32xf32>
    %345 = math.tanh %344 : vector<8x32xf32>
    %346 = arith.mulf %342, %327 : vector<8x32xf32>
    %347 = arith.mulf %341, %345 : vector<8x32xf32>
    %348 = arith.addf %346, %347 : vector<8x32xf32>
    %349 = math.tanh %348 : vector<8x32xf32>
    %350 = arith.mulf %343, %349 : vector<8x32xf32>
    %c7_i32_99 = arith.constant 7 : i32
    %c8_i32_100 = arith.constant 8 : i32
    %351 = arith.muli %c7_i32_99, %c8_i32_100 : i32
    %352 = tpu.assume_multiple %351, 8 : i32
    %353 = arith.index_cast %352 : i32 to index
    %c0_101 = arith.constant 0 : index
    %354 = vector.load %arg10[%353, %c0_101] : memref<64x128xf32, #tpu.memory_space<vmem>>, vector<8x128xf32>
    %cst_102 = arith.constant dense<0.000000e+00> : vector<8x128xf32>
    %355 = tpu.matmul %350, %201, %cst_102 {dimension_numbers = #tpu.dot_dimension_numbers<[1], [0], [0], [1], [0, 0, 1, 1], [], []>} : vector<8x32xf32>, vector<32x128xf32>, vector<8x128xf32> -> vector<8x128xf32>
    %356 = arith.addf %354, %355 : vector<8x128xf32>
    %357 = arith.negf %356 : vector<8x128xf32>
    %358 = math.exp %357 : vector<8x128xf32>
    %cst_103 = arith.constant 1.000000e+00 : f32
    %359 = vector.broadcast %cst_103 : f32 to vector<8x128xf32>
    %360 = arith.addf %359, %358 : vector<8x128xf32>
    %361 = arith.divf %359, %360 : vector<8x128xf32>
    %362 = vector.extract_strided_slice %361 {offsets = [0, 0], sizes = [8, 32], strides = [1, 1]} : vector<8x128xf32> to vector<8x32xf32>
    %363 = vector.extract_strided_slice %361 {offsets = [0, 32], sizes = [8, 32], strides = [1, 1]} : vector<8x128xf32> to vector<8x32xf32>
    %364 = vector.extract_strided_slice %361 {offsets = [0, 96], sizes = [8, 32], strides = [1, 1]} : vector<8x128xf32> to vector<8x32xf32>
    %365 = vector.extract_strided_slice %356 {offsets = [0, 64], sizes = [8, 32], strides = [1, 1]} : vector<8x128xf32> to vector<8x32xf32>
    %366 = math.tanh %365 : vector<8x32xf32>
    %367 = arith.mulf %363, %348 : vector<8x32xf32>
    %368 = arith.mulf %362, %366 : vector<8x32xf32>
    %369 = arith.addf %367, %368 : vector<8x32xf32>
    %370 = math.tanh %369 : vector<8x32xf32>
    %371 = arith.mulf %364, %370 : vector<8x32xf32>
    %c8_i32_104 = arith.constant 8 : i32
    %c0_105 = arith.constant 0 : index
    %c0_106 = arith.constant 0 : index
    %372 = vector.load %arg7[%c0_105, %c0_106] : memref<32x128xf32, #tpu.memory_space<vmem>>, vector<32x128xf32>
    %cst_107 = arith.constant dense<0.000000e+00> : vector<8x128xf32>
    %373 = tpu.matmul %371, %372, %cst_107 {dimension_numbers = #tpu.dot_dimension_numbers<[1], [0], [0], [1], [0, 0, 1, 1], [], []>} : vector<8x32xf32>, vector<32x128xf32>, vector<8x128xf32> -> vector<8x128xf32>
    %c0_108 = arith.constant 0 : index
    %c0_109 = arith.constant 0 : index
    %374 = vector.load %arg8[%c0_108, %c0_109] : memref<1x128xf32, #tpu.memory_space<vmem>>, vector<1x128xf32>
    %375 = vector.broadcast %374 : vector<1x128xf32> to vector<8x128xf32>
    %376 = arith.addf %373, %375 : vector<8x128xf32>
    %c0_110 = arith.constant 0 : index
    %c0_111 = arith.constant 0 : index
    %377 = vector.load %arg9[%c0_110, %c0_111] : memref<8x128xf32, #tpu.memory_space<vmem>>, vector<8x128xf32>
    tpu.vector_store %arg9[%c0_110, %c0_111], %376 {strides = array<i32>} : memref<8x128xf32, #tpu.memory_space<vmem>>, vector<8x128xf32>,
    return
  }
}

</mosaic_0001>

<bundles_post_ra>
// kernel: lstm_forward.1
= control target key start
LH: loop header
LB: loop body
LE: loop exit
PB: predicated region body
PF: predicated region fallthrough
CT: control target
= control target key end

     0   :  { %14 = vsyncpa [#allocation5], 0  ;;  %s1534_s12 = smov [#allocation4]   ;;  %s1535_s14 = smov 128   ;;  %s1899_s0 = inlined_call_operand.vmem [shape: f32[64,16], index: 0, kind: input, shape index: {}]   ;;  %s1900_s1 = inlined_call_operand.vmem [shape: f32[16,128], index: 1, kind: input, shape index: {}]   ;;  %s1901_s2 = inlined_call_operand.vmem [shape: f32[32,128], index: 2, kind: input, shape index: {}]   ;;  %s1902_s3 = inlined_call_operand.vmem [shape: f32[1,128], index: 3, kind: input, shape index: {}]   ;;  %s1903_s4 = inlined_call_operand.vmem [shape: f32[32,128], index: 4, kind: input, shape index: {}]   ;;  %s1904_s5 = inlined_call_operand.vmem [shape: f32[32,128], index: 5, kind: input, shape index: {}]   ;;  %s1905_s6 = inlined_call_operand.vmem [shape: f32[1,128], index: 6, kind: input, shape index: {}]   ;;  %s1906_s7 = inlined_call_operand.hbm [shape: f32[32,128], index: 7, kind: input, shape index: {}]   ;;  %s1907_s8 = inlined_call_operand.vmem [shape: f32[1,128], index: 8, kind: input, shape index: {}]   ;;  %s1908_s9 = inlined_call_operand.vmem [shape: f32[8,128], index: 9, kind: output, shape index: {}]  }
   0x1   :  { %s33_s11 = sshll.u32 %s1906_s7, 4  ;;  %s35_s13 = sshll.u32 %s1534_s12, 4  ;;  %s34_s11 = int_to_ptr.hbm [resolvable:$true] %s33_s11  ;;  %s36_s13 = int_to_ptr.vmem [resolvable:$true] %s35_s13 }
   0x2   :  { %s1536_s15 = smov 8  }
   0x3   :  { %41 = dma.hbm_to_vmem [thread:$0]  %s34_s11, 512, %s36_s13, [#allocation5], %s1535_s14, %s1535_s14, %s1536_s15  }
   0x4   :  { %1532 = dma.done.wait [#allocation5], 512  }
   0x5   :  { %1533 = vsyncadd [#allocation5], 4294966784  ;;  %v1596_v0 = vld [vmem:[%s1901_s2 + $0x18] sm:$0xff]  ;;  %v57_v1 = vld [vmem:[%s1900_s1 + $0x8] sm:$0xff]  ;;  %vm62_vm0 = vcmask 130048   ;;  %v1537_v7 = vmov 0.0  }
   0x6   :  { %v1604_v2 = vld [vmem:[%s1901_s2 + $0x10] sm:$0xff]  ;;  %157 = vmatpush.msra.mxu1 %v1596_v0  ;;  %101 = vmatpush.msra.mxu0 %v57_v1  ;;  %v56_v3 = vld [vmem:[%s1900_s1] sm:$0xff]  ;;  %v1616_v5 = vld [vmem:[%s1901_s2 + $0x8] sm:$0xff]  ;;  %s1538_s29 = smov 64   ;;  %s1539_s30 = smov 32   ;;  %vm141_vm5 = vcmask 261120  }
   0x7   :  { %v48_v4 = vld [vmem:[%s1899_s0] sm:$0xff]  ;;  %224 = vmatpush.msra.mxu2 %v1596_v0  ;;  %v695_v35 = vld [vmem:[%s1903_s4 + $0x18] sm:$0xff]  ;;  %v694_v36 = vld [vmem:[%s1903_s4 + $0x10] sm:$0xff] }
   0x8   :  { %158 = vmatpush.msra.mxu1 %v1604_v2  ;;  %102 = vmatpush.msra.mxu0 %v56_v3  ;;  %v1624_v6 = vld [vmem:[%s1901_s2] sm:$0xff]  ;;  %v49_v37 = vld [vmem:[%s1899_s0 + $0x8] sm:$0xff] }
   0x9   :  { %1323 = vmatmul.msk.f32.vlgmr.msra.gmra.mxu0 %vm62_vm0, %v48_v4  ;;  %225 = vmatpush.msra.mxu2 %v1604_v2  ;;  %v1651_v8 = vld [vmem:[%s1902_s3] ss:$0 sm:$0xff]  ;;  %v693_v38 = vld [vmem:[%s1903_s4 + $0x8] sm:$0xff] }
   0xa   :  { %159 = vmatpush.msra.mxu1 %v1616_v5  ;;  %496 = vmatpush.msrb.mxu0 %v1596_v0  ;;  %v692_v39 = vld [vmem:[%s1903_s4] sm:$0xff] }
   0xb   :  { %226 = vmatpush.msra.mxu2 %v1616_v5  ;;  %736 = vmatpush.msra.mxu3 %v695_v35 }
   0xc   :  { %160 = vmatpush.msra.mxu1 %v1624_v6  ;;  %497 = vmatpush.msrb.mxu0 %v1604_v2 }
   0xd   :  { %161 = vmatmul.f32.vlgmr.msra.gmra.mxu1 %v1537_v7  ;;  %227 = vmatpush.msra.mxu2 %v1624_v6 }
   0xe   :  { %360 = vmatpush.msrb.mxu1 %v1596_v0  ;;  %498 = vmatpush.msrb.mxu0 %v1616_v5 }
   0xf   :  { %292 = vmatpush.msrb.mxu2 %v1596_v0  ;;  %737 = vmatpush.msra.mxu3 %v694_v36 }
  0x10   :  { %361 = vmatpush.msrb.mxu1 %v1604_v2  ;;  %499 = vmatpush.msrb.mxu0 %v1624_v6 }
  0x11   :  { %293 = vmatpush.msrb.mxu2 %v1604_v2  ;;  %1324 = vmatmul.msk.f32.gmra.mxu0 %vm62_vm0, %v49_v37 }
  0x12   :  { %362 = vmatpush.msrb.mxu1 %v1616_v5  ;;  %738 = vmatpush.msra.mxu3 %v693_v38 }
  0x13   :  { %294 = vmatpush.msrb.mxu2 %v1616_v5 }
  0x14   :  { %363 = vmatpush.msrb.mxu1 %v1624_v6  ;;  %739 = vmatpush.msra.mxu3 %v692_v39 }
  0x15   :  { %295 = vmatpush.msrb.mxu2 %v1624_v6 }
  0x16   :  { %564 = vmatpush.msra.mxu1 %v1596_v0 }
  0x18   :  { %565 = vmatpush.msra.mxu1 %v1604_v2 }
  0x1a   :  { %566 = vmatpush.msra.mxu1 %v1616_v5 }
  0x1c   :  { %567 = vmatpush.msra.mxu1 %v1624_v6 }
  0x86   :  { %v104_v9 = vpop.f32.mrf.mxu0 }
  0x87   :  { %v105_v10 = vadd.f32 %v1651_v8, %v104_v9 }
  0x8a   :  { %v162_v11 = vpop.f32.mrf.mxu1 }
  0x8b   :  { %v165_v12 = vadd.f32 %v162_v11, %v105_v10  ;;  %v50_v10 = vld [vmem:[%s1899_s0 + $0x10] sm:$0xff] }
  0x8c   :  { %1325 = vmatmul.msk.f32.gmra.mxu0 %vm62_vm0, %v50_v10 }
  0x8d   :  { %1379 = vtanh.f32 %v165_v12  ;;  %v1331_v14 = vmul.f32 -1.442695, %v165_v12 }
  0x8e   :  { %v107_v42 = vpop.f32.mrf.mxu0 }
  0x8f   :  { %1381 = vpow2.f32 %v1331_v14  ;;  %v108_v43 = vadd.f32 %v1651_v8, %v107_v42 }
  0x93   :  { %v1380_v13 = vpop.eup %1379 }
  0x94   :  { %188 = vrot.lane.b32.xlu0 %v1380_v13, %s1538_s29 }
  0x95   :  { %v1382_v15 = vpop.eup %1381 }
  0x96   :  { %v169_v16 = vadd.f32 1.0, %v1382_v15 }
  0x98   :  { %1383 = vrcp.f32 %v169_v16  ;;  %v181_v22 = vand.u32 2147483648, %v169_v16  ;;  %vm175_vm2 = vweird.f32 %v169_v16  ;;  %v179_v23 = vand.u32 2147483647, %v169_v16 }
  0x9a   :  { %v182_v25 = vor.u32 1.1754944e-38, %v181_v22  ;;  %vm180_vm4 = vcmp.eq.f32.partialorder %v179_v23, 8.507059e+37 }
  0x9e   :  { %v1384_v17 = vpop.eup %1383 }
  0x9f   :  { %v171_v18 = vmul.f32 %v1384_v17, %v169_v16  ;;  %vm176_vm1 = vweird.f32 %v1384_v17 }
  0xa0   :  { %vm177_vm3 = vmor %vm175_vm2, %vm176_vm1 }
  0xa1   :  { %v172_v19 = vsub.f32 1.0, %v171_v18 }
  0xa3   :  { %v173_v20 = vmul.f32 %v1384_v17, %v172_v19 }
  0xa5   :  { %v174_v21 = vadd.f32 %v1384_v17, %v173_v20 }
  0xa7   :  { %v178_v24 = vsel %vm177_vm3, %v1384_v17, %v174_v21 }
  0xa8   :  { %v183_v27 = vsel %vm180_vm4, %v182_v25, %v178_v24 }
  0xa9   :  { %v186_v29 = vmul.f32 0.0, %v183_v27 }
 0x106   :  { %v189_v26 = vpop.permute.xlu0 %188 }
 0x107   :  { %v191_v28 = vmul.f32 %v189_v26, %v183_v27 }
 0x109   :  { %193 = vrot.lane.b32.xlu0 %v191_v28, %s1539_s30  ;;  %v110_v13 = vpop.f32.mrf.mxu0 }
 0x10a   :  { %v111_v14 = vadd.f32 %v1651_v8, %v110_v13 }
 0x17b   :  { %v194_v30 = vpop.permute.xlu0 %193 }
 0x17c   :  { %v196_v31 = vadd.f32 %v194_v30, %v186_v29 }
 0x17e   :  { %1385 = vtanh.f32 %v196_v31 }
 0x184   :  { %v1386_v32 = vpop.eup %1385 }
 0x185   :  { %199 = vrot.lane.b32.xlu1 %v1386_v32, %s1538_s29 }
 0x1f7   :  { %v200_v33 = vpop.permute.xlu1 %199 }
 0x1f8   :  { %v202_v34 = vmul.f32 %v200_v33, %v183_v27  ;;  %v51_v33 = vld [vmem:[%s1899_s0 + $0x18] sm:$0xff] }
 0x1f9   :  { %1326 = vmatmul.msk.f32.gmra.mxu0 %vm62_vm0, %v51_v33 }
 0x1fa   :  { %204 = vrot.lane.b32.xlu1 %v202_v34, %s1539_s30 }
 0x26c   :  { %v205_v40 = vpop.permute.xlu1 %204 }
 0x26d   :  { %207 = vst.msk [vmem:[#allocation3] sm:$0xff] %vm141_vm5, %v205_v40  ;;  %1332 = vmatmul.msk.f32.vlgmr.msra.gmra.mxu2 %vm141_vm5, %v205_v40 }
 0x26e   :  { %428 = vmatpush.msra.mxu2 %v1596_v0 }
 0x270   :  { %429 = vmatpush.msra.mxu2 %v1604_v2 }
 0x272   :  { %430 = vmatpush.msra.mxu2 %v1616_v5 }
 0x274   :  { %v684_v41 = vld [vmem:[#allocation3] sm:$0xff]  ;;  %431 = vmatpush.msra.mxu2 %v1624_v6 }
 0x275   :  { %1346 = vmatmul.msk.f32.vlgmr.msra.gmra.mxu3 %vm141_vm5, %v684_v41 }
 0x276   :  { %v113_v38 = vpop.f32.mrf.mxu0 }
 0x277   :  { %v114_v39 = vadd.f32 %v1651_v8, %v113_v38 }
 0x2f0   :  { %v229_v44 = vpop.f32.mrf.mxu2 }
 0x2f1   :  { %v232_v45 = vadd.f32 %v229_v44, %v108_v43 }
 0x2f3   :  { %1387 = vtanh.f32 %v232_v45  ;;  %v1333_v47 = vmul.f32 -1.442695, %v232_v45 }
 0x2f5   :  { %1389 = vpow2.f32 %v1333_v47 }
 0x2f9   :  { %v1388_v46 = vpop.eup %1387 }
 0x2fa   :  { %255 = vrot.lane.b32.xlu2 %v1388_v46, %s1538_s29 }
 0x2fb   :  { %v1390_v48 = vpop.eup %1389 }
 0x2fc   :  { %v236_v49 = vadd.f32 1.0, %v1390_v48 }
 0x2fe   :  { %1391 = vrcp.f32 %v236_v49  ;;  %v248_v55 = vand.u32 2147483648, %v236_v49  ;;  %vm242_vm7 = vweird.f32 %v236_v49  ;;  %v246_v56 = vand.u32 2147483647, %v236_v49 }
 0x300   :  { %v249_v58 = vor.u32 1.1754944e-38, %v248_v55  ;;  %vm247_vm9 = vcmp.eq.f32.partialorder %v246_v56, 8.507059e+37 }
 0x304   :  { %v1392_v50 = vpop.eup %1391 }
 0x305   :  { %v238_v51 = vmul.f32 %v1392_v50, %v236_v49  ;;  %vm243_vm6 = vweird.f32 %v1392_v50 }
 0x306   :  { %vm244_vm8 = vmor %vm242_vm7, %vm243_vm6 }
 0x307   :  { %v239_v52 = vsub.f32 1.0, %v238_v51 }
 0x309   :  { %v240_v53 = vmul.f32 %v1392_v50, %v239_v52 }
 0x30b   :  { %v241_v54 = vadd.f32 %v1392_v50, %v240_v53 }
 0x30d   :  { %v245_v57 = vsel %vm244_vm8, %v1392_v50, %v241_v54 }
 0x30e   :  { %v250_v60 = vsel %vm247_vm9, %v249_v58, %v245_v57 }
 0x30f   :  { %v253_v62 = vmul.f32 %v250_v60, %v196_v31 }
 0x354   :  { %v256_v59 = vpop.permute.xlu2 %255 }
 0x355   :  { %v258_v61 = vmul.f32 %v256_v59, %v250_v60 }
 0x357   :  { %260 = vrot.lane.b32.xlu2 %v258_v61, %s1539_s30 }
 0x3b1   :  { %v261_v63 = vpop.permute.xlu2 %260 }
 0x3b2   :  { %v263_v1 = vadd.f32 %v261_v63, %v253_v62 }
 0x3b4   :  { %1393 = vtanh.f32 %v263_v1 }
 0x3ba   :  { %v1394_v3 = vpop.eup %1393 }
 0x3bb   :  { %266 = vrot.lane.b32.xlu0 %v1394_v3, %s1538_s29 }
 0x42d   :  { %v267_v4 = vpop.permute.xlu0 %266 }
 0x42e   :  { %v269_v9 = vmul.f32 %v267_v4, %v250_v60 }
 0x430   :  { %271 = vrot.lane.b32.xlu1 %v269_v9, %s1539_s30 }
 0x4a2   :  { %v272_v11 = vpop.permute.xlu1 %271 }
 0x4a3   :  { %275 = vst.msk [vmem:[#allocation3 + $0x8] sm:$0xff] %vm141_vm5, %v272_v11  ;;  %1334 = vmatmul.msk.f32.vlgmr.msrb.gmra.mxu2 %vm141_vm5, %v272_v11 }
 0x4a4   :  { %632 = vmatpush.msrb.mxu2 %v1596_v0 }
 0x4a6   :  { %633 = vmatpush.msrb.mxu2 %v1604_v2 }
 0x4a8   :  { %634 = vmatpush.msrb.mxu2 %v1616_v5 }
 0x4aa   :  { %v685_v12 = vld [vmem:[#allocation3 + $0x8] sm:$0xff]  ;;  %635 = vmatpush.msrb.mxu2 %v1624_v6 }
 0x4ab   :  { %1347 = vmatmul.msk.f32.gmra.mxu3 %vm141_vm5, %v685_v12 }
 0x526   :  { %v297_v15 = vpop.f32.mrf.mxu2 }
 0x527   :  { %v300_v16 = vadd.f32 %v297_v15, %v111_v14 }
 0x529   :  { %1395 = vtanh.f32 %v300_v16  ;;  %v1335_v18 = vmul.f32 -1.442695, %v300_v16 }
 0x52b   :  { %1397 = vpow2.f32 %v1335_v18 }
 0x52f   :  { %v1396_v17 = vpop.eup %1395 }
 0x530   :  { %323 = vrot.lane.b32.xlu2 %v1396_v17, %s1538_s29 }
 0x531   :  { %v1398_v0 = vpop.eup %1397 }
 0x532   :  { %v304_v2 = vadd.f32 1.0, %v1398_v0 }
 0x534   :  { %1399 = vrcp.f32 %v304_v2  ;;  %v316_v22 = vand.u32 2147483648, %v304_v2  ;;  %vm310_vm11 = vweird.f32 %v304_v2  ;;  %v314_v23 = vand.u32 2147483647, %v304_v2 }
 0x536   :  { %v317_v25 = vor.u32 1.1754944e-38, %v316_v22  ;;  %vm315_vm13 = vcmp.eq.f32.partialorder %v314_v23, 8.507059e+37 }
 0x53a   :  { %v1400_v5 = vpop.eup %1399 }
 0x53b   :  { %v306_v19 = vmul.f32 %v1400_v5, %v304_v2  ;;  %vm311_vm10 = vweird.f32 %v1400_v5 }
 0x53c   :  { %vm312_vm12 = vmor %vm310_vm11, %vm311_vm10 }
 0x53d   :  { %v307_v20 = vsub.f32 1.0, %v306_v19 }
 0x53f   :  { %v308_v6 = vmul.f32 %v1400_v5, %v307_v20 }
 0x541   :  { %v309_v21 = vadd.f32 %v1400_v5, %v308_v6 }
 0x543   :  { %v313_v24 = vsel %vm312_vm12, %v1400_v5, %v309_v21 }
 0x544   :  { %v318_v27 = vsel %vm315_vm13, %v317_v25, %v313_v24 }
 0x545   :  { %v321_v29 = vmul.f32 %v318_v27, %v263_v1  ;;  %v52_v1 = vld [vmem:[%s1899_s0 + $0x20] sm:$0xff] }
 0x546   :  { %1327 = vmatmul.msk.f32.gmra.mxu0 %vm62_vm0, %v52_v1  ;;  %v1756_v1 = vld [vmem:[%s1904_s5 + $0x18] sm:$0xff] }
 0x58a   :  { %v324_v26 = vpop.permute.xlu2 %323 }
 0x58b   :  { %v326_v28 = vmul.f32 %v324_v26, %v318_v27 }
 0x58d   :  { %328 = vrot.lane.b32.xlu0 %v326_v28, %s1539_s30 }
 0x5c3   :  { %v116_v9 = vpop.f32.mrf.mxu0 }
 0x5c4   :  { %v117_v10 = vadd.f32 %v1651_v8, %v116_v9  ;;  %v1775_v9 = vld [vmem:[%s1904_s5] sm:$0xff] }
 0x5ff   :  { %v329_v30 = vpop.permute.xlu0 %328 }
 0x600   :  { %v331_v31 = vadd.f32 %v329_v30, %v321_v29  ;;  %v53_v29 = vld [vmem:[%s1899_s0 + $0x28] sm:$0xff]  ;;  %v54_v30 = vld [vmem:[%s1899_s0 + $0x30] sm:$0xff] }
 0x601   :  { %1328 = vmatmul.msk.f32.gmra.mxu0 %vm62_vm0, %v53_v29 }
 0x602   :  { %1401 = vtanh.f32 %v331_v31 }
 0x608   :  { %v1402_v32 = vpop.eup %1401 }
 0x609   :  { %334 = vrot.lane.b32.xlu1 %v1402_v32, %s1538_s29  ;;  %1329 = vmatmul.msk.f32.gmra.mxu0 %vm62_vm0, %v54_v30 }
 0x67b   :  { %v335_v34 = vpop.permute.xlu1 %334 }
 0x67c   :  { %v337_v35 = vmul.f32 %v335_v34, %v318_v27 }
 0x67e   :  { %339 = vrot.lane.b32.xlu2 %v337_v35, %s1539_s30 }
 0x6d8   :  { %v340_v36 = vpop.permute.xlu2 %339 }
 0x6d9   :  { %343 = vst.msk [vmem:[#allocation3 + $0x10] sm:$0xff] %vm141_vm5, %v340_v36  ;;  %1336 = vmatmul.msk.f32.vlgmr.msrb.gmra.mxu1 %vm141_vm5, %v340_v36  ;;  %v119_v36 = vpop.f32.mrf.mxu0 }
 0x6da   :  { %790 = vmatpush.msrb.mxu1 %v1756_v1 }
 0x6e0   :  { %v686_v37 = vld [vmem:[#allocation3 + $0x10] sm:$0xff] }
 0x6e1   :  { %1348 = vmatmul.msk.f32.gmra.mxu3 %vm141_vm5, %v686_v37  ;;  %v1741_v37 = vpop.f32.mrf.mxu0 }
 0x756   :  { %v365_v40 = vpop.f32.mrf.mxu1 }
 0x757   :  { %v368_v41 = vadd.f32 %v365_v40, %v114_v39  ;;  %v120_v39 = vadd.f32 %v1651_v8, %v119_v36 }
 0x759   :  { %1403 = vtanh.f32 %v368_v41  ;;  %v1337_v43 = vmul.f32 -1.442695, %v368_v41 }
 0x75b   :  { %1405 = vpow2.f32 %v1337_v43 }
 0x75f   :  { %v1404_v42 = vpop.eup %1403 }
 0x760   :  { %391 = vrot.lane.b32.xlu0 %v1404_v42, %s1538_s29 }
 0x761   :  { %v1406_v44 = vpop.eup %1405 }
 0x762   :  { %v372_v45 = vadd.f32 1.0, %v1406_v44 }
 0x764   :  { %1407 = vrcp.f32 %v372_v45  ;;  %v384_v51 = vand.u32 2147483648, %v372_v45  ;;  %vm378_vm15 = vweird.f32 %v372_v45  ;;  %v382_v52 = vand.u32 2147483647, %v372_v45 }
 0x766   :  { %v385_v54 = vor.u32 1.1754944e-38, %v384_v51  ;;  %vm383_vm2 = vcmp.eq.f32.partialorder %v382_v52, 8.507059e+37 }
 0x76a   :  { %v1408_v46 = vpop.eup %1407 }
 0x76b   :  { %v374_v47 = vmul.f32 %v1408_v46, %v372_v45  ;;  %vm379_vm14 = vweird.f32 %v1408_v46 }
 0x76c   :  { %vm380_vm1 = vmor %vm378_vm15, %vm379_vm14 }
 0x76d   :  { %v375_v48 = vsub.f32 1.0, %v374_v47 }
 0x76f   :  { %v376_v49 = vmul.f32 %v1408_v46, %v375_v48 }
 0x771   :  { %v377_v50 = vadd.f32 %v1408_v46, %v376_v49 }
 0x773   :  { %v381_v53 = vsel %vm380_vm1, %v1408_v46, %v377_v50 }
 0x774   :  { %v386_v56 = vsel %vm383_vm2, %v385_v54, %v381_v53 }
 0x775   :  { %v389_v58 = vmul.f32 %v386_v56, %v331_v31  ;;  %v55_v31 = vld [vmem:[%s1899_s0 + $0x38] sm:$0xff] }
 0x776   :  { %1330 = vmatmul.msk.f32.gmra.mxu0 %vm62_vm0, %v55_v31 }
 0x7d2   :  { %v392_v55 = vpop.permute.xlu0 %391 }
 0x7d3   :  { %v394_v57 = vmul.f32 %v392_v55, %v386_v56 }
 0x7d5   :  { %396 = vrot.lane.b32.xlu1 %v394_v57, %s1539_s30 }
 0x7f3   :  { %v1743_v38 = vpop.f32.mrf.mxu0 }
 0x847   :  { %v397_v59 = vpop.permute.xlu1 %396 }
 0x848   :  { %v399_v60 = vadd.f32 %v397_v59, %v389_v58 }
 0x84a   :  { %1409 = vtanh.f32 %v399_v60 }
 0x850   :  { %v1410_v61 = vpop.eup %1409 }
 0x851   :  { %402 = vrot.lane.b32.xlu2 %v1410_v61, %s1538_s29 }
 0x8ab   :  { %v403_v62 = vpop.permute.xlu2 %402 }
 0x8ac   :  { %v405_v63 = vmul.f32 %v403_v62, %v386_v56 }
 0x8ae   :  { %407 = vrot.lane.b32.xlu0 %v405_v63, %s1539_s30 }
 0x920   :  { %v408_v3 = vpop.permute.xlu0 %407 }
 0x921   :  { %411 = vst.msk [vmem:[#allocation3 + $0x18] sm:$0xff] %vm141_vm5, %v408_v3  ;;  %1338 = vmatmul.msk.f32.vlgmr.msra.gmra.mxu2 %vm141_vm5, %v408_v3  ;;  %v1761_v3 = vld [vmem:[%s1904_s5 + $0x10] sm:$0xff] }
 0x922   :  { %854 = vmatpush.msra.mxu2 %v1756_v1  ;;  %791 = vmatpush.msrb.mxu1 %v1761_v3 }
 0x924   :  { %855 = vmatpush.msra.mxu2 %v1761_v3 }
 0x928   :  { %v687_v4 = vld [vmem:[#allocation3 + $0x18] sm:$0xff] }
 0x929   :  { %1349 = vmatmul.msk.f32.gmra.mxu3 %vm141_vm5, %v687_v4  ;;  %v1768_v4 = vld [vmem:[%s1904_s5 + $0x8] sm:$0xff] }
 0x92a   :  { %792 = vmatpush.msrb.mxu1 %v1768_v4  ;;  %856 = vmatpush.msra.mxu2 %v1768_v4 }
 0x92c   :  { %793 = vmatpush.msrb.mxu1 %v1775_v9  ;;  %857 = vmatpush.msra.mxu2 %v1775_v9 }
 0x9a4   :  { %v433_v11 = vpop.f32.mrf.mxu2 }
 0x9a5   :  { %v436_v12 = vadd.f32 %v433_v11, %v117_v10 }
 0x9a7   :  { %1411 = vtanh.f32 %v436_v12  ;;  %v1339_v14 = vmul.f32 -1.442695, %v436_v12  ;;  %v123_v12 = vadd.f32 %v1651_v8, %v1741_v37 }
 0x9a9   :  { %1413 = vpow2.f32 %v1339_v14 }
 0x9ad   :  { %v1412_v13 = vpop.eup %1411 }
 0x9ae   :  { %459 = vrot.lane.b32.xlu1 %v1412_v13, %s1538_s29 }
 0x9af   :  { %v1414_v15 = vpop.eup %1413 }
 0x9b0   :  { %v440_v16 = vadd.f32 1.0, %v1414_v15  ;;  %v1798_v15 = vld [vmem:[%s1905_s6] ss:$0 sm:$0xff] }
 0x9b2   :  { %1415 = vrcp.f32 %v440_v16  ;;  %v452_v19 = vand.u32 2147483648, %v440_v16  ;;  %vm446_vm4 = vweird.f32 %v440_v16  ;;  %v450_v20 = vand.u32 2147483647, %v440_v16 }
 0x9b4   :  { %v453_v21 = vor.u32 1.1754944e-38, %v452_v19  ;;  %vm451_vm7 = vcmp.eq.f32.partialorder %v450_v20, 8.507059e+37 }
 0x9b8   :  { %v1416_v17 = vpop.eup %1415 }
 0x9b9   :  { %v442_v18 = vmul.f32 %v1416_v17, %v440_v16  ;;  %vm447_vm3 = vweird.f32 %v1416_v17 }
 0x9ba   :  { %vm448_vm6 = vmor %vm446_vm4, %vm447_vm3 }
 0x9bb   :  { %v443_v0 = vsub.f32 1.0, %v442_v18 }
 0x9bd   :  { %v444_v2 = vmul.f32 %v1416_v17, %v443_v0 }
 0x9bf   :  { %v445_v5 = vadd.f32 %v1416_v17, %v444_v2 }
 0x9c1   :  { %v449_v6 = vsel %vm448_vm6, %v1416_v17, %v445_v5 }
 0x9c2   :  { %v454_v23 = vsel %vm451_vm7, %v453_v21, %v449_v6 }
 0x9c3   :  { %v457_v25 = vmul.f32 %v454_v23, %v399_v60 }
 0xa20   :  { %v460_v22 = vpop.permute.xlu1 %459 }
 0xa21   :  { %v462_v24 = vmul.f32 %v460_v22, %v454_v23 }
 0xa23   :  { %464 = vrot.lane.b32.xlu2 %v462_v24, %s1539_s30 }
 0xa7d   :  { %v465_v26 = vpop.permute.xlu2 %464 }
 0xa7e   :  { %v467_v27 = vadd.f32 %v465_v26, %v457_v25 }
 0xa80   :  { %1417 = vtanh.f32 %v467_v27 }
 0xa86   :  { %v1418_v28 = vpop.eup %1417 }
 0xa87   :  { %470 = vrot.lane.b32.xlu0 %v1418_v28, %s1538_s29 }
 0xaf9   :  { %v471_v32 = vpop.permute.xlu0 %470 }
 0xafa   :  { %v473_v33 = vmul.f32 %v471_v32, %v454_v23 }
 0xafc   :  { %475 = vrot.lane.b32.xlu1 %v473_v33, %s1539_s30 }
 0xb6e   :  { %v476_v34 = vpop.permute.xlu1 %475 }
 0xb6f   :  { %479 = vst.msk [vmem:[#allocation3 + $0x20] sm:$0xff] %vm141_vm5, %v476_v34  ;;  %1340 = vmatmul.msk.f32.vlgmr.msrb.gmra.mxu0 %vm141_vm5, %v476_v34 }
 0xb76   :  { %v688_v35 = vld [vmem:[#allocation3 + $0x20] sm:$0xff] }
 0xb77   :  { %1350 = vmatmul.msk.f32.gmra.mxu3 %vm141_vm5, %v688_v35 }
 0xbec   :  { %v501_v40 = vpop.f32.mrf.mxu0 }
 0xbed   :  { %v504_v41 = vadd.f32 %v501_v40, %v120_v39 }
 0xbef   :  { %1419 = vtanh.f32 %v504_v41  ;;  %v1341_v43 = vmul.f32 -1.442695, %v504_v41 }
 0xbf1   :  { %1421 = vpow2.f32 %v1341_v43 }
 0xbf5   :  { %v1420_v42 = vpop.eup %1419 }
 0xbf6   :  { %527 = vrot.lane.b32.xlu2 %v1420_v42, %s1538_s29 }
 0xbf7   :  { %v1422_v44 = vpop.eup %1421 }
 0xbf8   :  { %v508_v45 = vadd.f32 1.0, %v1422_v44 }
 0xbfa   :  { %1423 = vrcp.f32 %v508_v45  ;;  %v520_v51 = vand.u32 2147483648, %v508_v45  ;;  %vm514_vm8 = vweird.f32 %v508_v45  ;;  %v518_v52 = vand.u32 2147483647, %v508_v45 }
 0xbfc   :  { %v521_v54 = vor.u32 1.1754944e-38, %v520_v51  ;;  %vm519_vm10 = vcmp.eq.f32.partialorder %v518_v52, 8.507059e+37 }
 0xc00   :  { %v1424_v46 = vpop.eup %1423 }
 0xc01   :  { %v510_v47 = vmul.f32 %v1424_v46, %v508_v45  ;;  %vm515_vm0 = vweird.f32 %v1424_v46 }
 0xc02   :  { %vm516_vm9 = vmor %vm514_vm8, %vm515_vm0 }
 0xc03   :  { %v511_v48 = vsub.f32 1.0, %v510_v47 }
 0xc05   :  { %v512_v49 = vmul.f32 %v1424_v46, %v511_v48 }
 0xc07   :  { %v513_v50 = vadd.f32 %v1424_v46, %v512_v49 }
 0xc09   :  { %v517_v53 = vsel %vm516_vm9, %v1424_v46, %v513_v50 }
 0xc0a   :  { %v522_v56 = vsel %vm519_vm10, %v521_v54, %v517_v53 }
 0xc0b   :  { %v525_v58 = vmul.f32 %v522_v56, %v467_v27 }
 0xc50   :  { %v528_v55 = vpop.permute.xlu2 %527 }
 0xc51   :  { %v530_v57 = vmul.f32 %v528_v55, %v522_v56 }
 0xc53   :  { %532 = vrot.lane.b32.xlu0 %v530_v57, %s1539_s30 }
 0xcc5   :  { %v533_v59 = vpop.permute.xlu0 %532 }
 0xcc6   :  { %v1748_v60 = vadd.f32 %v533_v59, %v525_v58 }
 0xcc8   :  { %1425 = vtanh.f32 %v1748_v60 }
 0xcce   :  { %v1426_v61 = vpop.eup %1425 }
 0xccf   :  { %538 = vrot.lane.b32.xlu1 %v1426_v61, %s1538_s29 }
 0xd41   :  { %v539_v62 = vpop.permute.xlu1 %538 }
 0xd42   :  { %v541_v63 = vmul.f32 %v539_v62, %v522_v56 }
 0xd44   :  { %543 = vrot.lane.b32.xlu2 %v541_v63, %s1539_s30 }
 0xd9e   :  { %v544_v10 = vpop.permute.xlu2 %543 }
 0xd9f   :  { %547 = vst.msk [vmem:[#allocation3 + $0x28] sm:$0xff] %vm141_vm5, %v544_v10  ;;  %1342 = vmatmul.msk.f32.vlgmr.msra.gmra.mxu1 %vm141_vm5, %v544_v10 }
 0xda0   :  { %918 = vmatpush.msra.mxu1 %v1756_v1 }
 0xda2   :  { %919 = vmatpush.msra.mxu1 %v1761_v3 }
 0xda4   :  { %920 = vmatpush.msra.mxu1 %v1768_v4 }
 0xda6   :  { %v689_v11 = vld [vmem:[#allocation3 + $0x28] sm:$0xff]  ;;  %921 = vmatpush.msra.mxu1 %v1775_v9 }
 0xda7   :  { %1351 = vmatmul.msk.f32.gmra.mxu3 %vm141_vm5, %v689_v11  ;;  %794 = vmatmul.f32.vlgmr.msrb.gmra.mxu1 %v1537_v7  ;;  %v741_v7 = vpop.f32.mrf.mxu3 }
 0xda8   :  { %1046 = vmatpush.msrb.mxu1 %v1756_v1  ;;  %v742_v16 = vadd.f32 %v1798_v15, %v741_v7 }
 0xdaa   :  { %1047 = vmatpush.msrb.mxu1 %v1761_v3 }
 0xdac   :  { %1048 = vmatpush.msrb.mxu1 %v1768_v4 }
 0xdae   :  { %1049 = vmatpush.msrb.mxu1 %v1775_v9 }
 0xdaf   :  { %v744_v63 = vpop.f32.mrf.mxu3 }
 0xdb0   :  { %v745_v10 = vadd.f32 %v1798_v15, %v744_v63 }
 0xe1c   :  { %v569_v13 = vpop.f32.mrf.mxu1 }
 0xe1d   :  { %v572_v14 = vadd.f32 %v569_v13, %v123_v12 }
 0xe1f   :  { %1427 = vtanh.f32 %v572_v14  ;;  %v1343_v8 = vmul.f32 -1.442695, %v572_v14 }
 0xe24   :  { %v795_v17 = vpop.f32.mrf.mxu1 }
 0xe25   :  { %v1428_v18 = vpop.eup %1427  ;;  %v798_v0 = vadd.f32 %v795_v17, %v742_v16 }
 0xe26   :  { %595 = vrot.lane.b32.xlu0 %v1428_v18, %s1538_s29 }
 0xe27   :  { %1429 = vtanh.f32 %v798_v0  ;;  %v1354_v5 = vmul.f32 -1.442695, %v798_v0 }
 0xe28   :  { %1431 = vpow2.f32 %v1343_v8 }
 0xe29   :  { %1433 = vpow2.f32 %v1354_v5 }
 0xe2d   :  { %v1430_v2 = vpop.eup %1429 }
 0xe2e   :  { %821 = vrot.lane.b32.xlu1 %v1430_v2, %s1538_s29  ;;  %v1432_v19 = vpop.eup %1431 }
 0xe2f   :  { %v576_v20 = vadd.f32 1.0, %v1432_v19  ;;  %v1434_v6 = vpop.eup %1433 }
 0xe30   :  { %v802_v21 = vadd.f32 1.0, %v1434_v6 }
 0xe31   :  { %1435 = vrcp.f32 %v576_v20  ;;  %v588_v30 = vand.u32 2147483648, %v576_v20  ;;  %vm582_vm12 = vweird.f32 %v576_v20  ;;  %v586_v31 = vand.u32 2147483647, %v576_v20 }
 0xe32   :  { %1437 = vrcp.f32 %v802_v21  ;;  %v814_v40 = vand.u32 2147483648, %v802_v21  ;;  %vm808_vm1 = vweird.f32 %v802_v21  ;;  %v812_v41 = vand.u32 2147483647, %v802_v21 }
 0xe33   :  { %v589_v34 = vor.u32 1.1754944e-38, %v588_v30  ;;  %vm587_vm14 = vcmp.eq.f32.partialorder %v586_v31, 8.507059e+37  ;;  %v747_v31 = vpop.f32.mrf.mxu3 }
 0xe34   :  { %v815_v43 = vor.u32 1.1754944e-38, %v814_v40  ;;  %vm813_vm3 = vcmp.eq.f32.partialorder %v812_v41, 8.507059e+37 }
 0xe37   :  { %v1436_v22 = vpop.eup %1435 }
 0xe38   :  { %v578_v23 = vmul.f32 %v1436_v22, %v576_v20  ;;  %v1438_v25 = vpop.eup %1437  ;;  %vm583_vm11 = vweird.f32 %v1436_v22 }
 0xe39   :  { %v804_v27 = vmul.f32 %v1438_v25, %v802_v21  ;;  %vm584_vm13 = vmor %vm582_vm12, %vm583_vm11  ;;  %vm809_vm15 = vweird.f32 %v1438_v25 }
 0xe3a   :  { %v579_v24 = vsub.f32 1.0, %v578_v23  ;;  %vm810_vm2 = vmor %vm808_vm1, %vm809_vm15 }
 0xe3b   :  { %v805_v29 = vsub.f32 1.0, %v804_v27 }
 0xe3c   :  { %v580_v26 = vmul.f32 %v1436_v22, %v579_v24 }
 0xe3d   :  { %v806_v33 = vmul.f32 %v1438_v25, %v805_v29 }
 0xe3e   :  { %v581_v28 = vadd.f32 %v1436_v22, %v580_v26 }
 0xe3f   :  { %v807_v39 = vadd.f32 %v1438_v25, %v806_v33 }
 0xe40   :  { %v585_v32 = vsel %vm584_vm13, %v1436_v22, %v581_v28 }
 0xe41   :  { %v590_v36 = vsel %vm587_vm14, %v589_v34, %v585_v32  ;;  %v811_v42 = vsel %vm810_vm2, %v1438_v25, %v807_v39  ;;  %v748_v32 = vadd.f32 %v1798_v15, %v747_v31 }
 0xe42   :  { %v816_v45 = vsel %vm813_vm3, %v815_v43, %v811_v42  ;;  %v593_v47 = vmul.f32 %v590_v36, %v1748_v60 }
 0xe43   :  { %v819_v51 = vmul.f32 0.0, %v816_v45 }
 0xe98   :  { %v596_v35 = vpop.permute.xlu0 %595 }
 0xe99   :  { %v598_v37 = vmul.f32 %v596_v35, %v590_v36 }
 0xe9b   :  { %600 = vrot.lane.b32.xlu2 %v598_v37, %s1539_s30 }
 0xea0   :  { %v822_v44 = vpop.permute.xlu1 %821 }
 0xea1   :  { %v824_v46 = vmul.f32 %v822_v44, %v816_v45 }
 0xea3   :  { %826 = vrot.lane.b32.xlu0 %v824_v46, %s1539_s30 }
 0xef5   :  { %v601_v48 = vpop.permute.xlu2 %600 }
 0xef6   :  { %v1806_v49 = vadd.f32 %v601_v48, %v593_v47 }
 0xef8   :  { %1439 = vtanh.f32 %v1806_v49 }
 0xefe   :  { %v1440_v50 = vpop.eup %1439 }
 0xeff   :  { %606 = vrot.lane.b32.xlu1 %v1440_v50, %s1538_s29 }
 0xf15   :  { %v827_v52 = vpop.permute.xlu0 %826 }
 0xf16   :  { %v829_v53 = vadd.f32 %v827_v52, %v819_v51 }
 0xf18   :  { %1441 = vtanh.f32 %v829_v53 }
 0xf1e   :  { %v1442_v54 = vpop.eup %1441 }
 0xf1f   :  { %832 = vrot.lane.b32.xlu2 %v1442_v54, %s1538_s29 }
 0xf71   :  { %v607_v55 = vpop.permute.xlu1 %606 }
 0xf72   :  { %v609_v56 = vmul.f32 %v607_v55, %v590_v36 }
 0xf74   :  { %611 = vrot.lane.b32.xlu0 %v609_v56, %s1539_s30 }
 0xf79   :  { %v833_v57 = vpop.permute.xlu2 %832 }
 0xf7a   :  { %v835_v58 = vmul.f32 %v833_v57, %v816_v45 }
 0xf7c   :  { %838 = vrot.lane.b32.xlu1 %v835_v58, %s1539_s30 }
 0xfe6   :  { %v612_v59 = vpop.permute.xlu0 %611 }
 0xfe7   :  { %615 = vst.msk [vmem:[#allocation3 + $0x30] sm:$0xff] %vm141_vm5, %v612_v59  ;;  %1344 = vmatmul.msk.f32.vlgmr.msrb.gmra.mxu2 %vm141_vm5, %v612_v59 }
 0xfe8   :  { %982 = vmatpush.msrb.mxu2 %v1756_v1 }
 0xfea   :  { %983 = vmatpush.msrb.mxu2 %v1761_v3 }
 0xfec   :  { %984 = vmatpush.msrb.mxu2 %v1768_v4 }
 0xfee   :  { %v839_v60 = vpop.permute.xlu1 %838  ;;  %v690_v61 = vld [vmem:[#allocation3 + $0x30] sm:$0xff]  ;;  %985 = vmatpush.msrb.mxu2 %v1775_v9 }
 0xfef   :  { %1352 = vmatmul.msk.f32.gmra.mxu3 %vm141_vm5, %v690_v61  ;;  %1355 = vmatmul.msk.f32.vlgmr.msra.gmra.mxu2 %vm141_vm5, %v839_v60  ;;  %v750_v60 = vpop.f32.mrf.mxu3 }
 0xff0   :  { %1110 = vmatpush.msra.mxu2 %v1756_v1  ;;  %v751_v61 = vadd.f32 %v1798_v15, %v750_v60 }
 0xff2   :  { %1111 = vmatpush.msra.mxu2 %v1761_v3 }
 0xff4   :  { %1112 = vmatpush.msra.mxu2 %v1768_v4 }
 0xff6   :  { %1113 = vmatpush.msra.mxu2 %v1775_v9 }
0x106a   :  { %v1825_v62 = vpop.f32.mrf.mxu2 }
0x1072   :  { %v859_v11 = vpop.f32.mrf.mxu2 }
0x1073   :  { %v862_v12 = vadd.f32 %v859_v11, %v745_v10 }
0x1075   :  { %1443 = vtanh.f32 %v862_v12  ;;  %v1356_v14 = vmul.f32 -1.442695, %v862_v12 }
0x1077   :  { %1445 = vpow2.f32 %v1356_v14 }
0x107b   :  { %v1444_v13 = vpop.eup %1443 }
0x107c   :  { %885 = vrot.lane.b32.xlu2 %v1444_v13, %s1538_s29 }
0x107d   :  { %v1446_v7 = vpop.eup %1445 }
0x107e   :  { %v866_v16 = vadd.f32 1.0, %v1446_v7 }
0x1080   :  { %1447 = vrcp.f32 %v866_v16  ;;  %v878_v5 = vand.u32 2147483648, %v866_v16  ;;  %vm872_vm6 = vweird.f32 %v866_v16  ;;  %v876_v19 = vand.u32 2147483647, %v866_v16 }
0x1082   :  { %v879_v6 = vor.u32 1.1754944e-38, %v878_v5  ;;  %vm877_vm0 = vcmp.eq.f32.partialorder %v876_v19, 8.507059e+37 }
0x1086   :  { %v1448_v17 = vpop.eup %1447 }
0x1087   :  { %v868_v18 = vmul.f32 %v1448_v17, %v866_v16  ;;  %vm873_vm4 = vweird.f32 %v1448_v17 }
0x1088   :  { %vm874_vm7 = vmor %vm872_vm6, %vm873_vm4 }
0x1089   :  { %v869_v0 = vsub.f32 1.0, %v868_v18 }
0x108b   :  { %v870_v2 = vmul.f32 %v1448_v17, %v869_v0 }
0x108d   :  { %v871_v8 = vadd.f32 %v1448_v17, %v870_v2 }
0x108f   :  { %v875_v20 = vsel %vm874_vm7, %v1448_v17, %v871_v8 }
0x1090   :  { %v880_v22 = vsel %vm877_vm0, %v879_v6, %v875_v20 }
0x1091   :  { %v883_v24 = vmul.f32 %v880_v22, %v829_v53 }
0x10d6   :  { %v886_v21 = vpop.permute.xlu2 %885 }
0x10d7   :  { %v888_v23 = vmul.f32 %v886_v21, %v880_v22 }
0x10d9   :  { %890 = vrot.lane.b32.xlu0 %v888_v23, %s1539_s30 }
0x114b   :  { %v891_v25 = vpop.permute.xlu0 %890 }
0x114c   :  { %v893_v26 = vadd.f32 %v891_v25, %v883_v24  ;;  %v753_v25 = vpop.f32.mrf.mxu3 }
0x114e   :  { %1449 = vtanh.f32 %v893_v26 }
0x1154   :  { %v1450_v27 = vpop.eup %1449 }
0x1155   :  { %896 = vrot.lane.b32.xlu1 %v1450_v27, %s1538_s29 }
0x11c7   :  { %v897_v28 = vpop.permute.xlu1 %896 }
0x11c8   :  { %v899_v29 = vmul.f32 %v897_v28, %v880_v22 }
0x11ca   :  { %902 = vrot.lane.b32.xlu2 %v899_v29, %s1539_s30 }
0x1224   :  { %v903_v30 = vpop.permute.xlu2 %902 }
0x1225   :  { %1357 = vmatmul.msk.f32.vlgmr.msra.gmra.mxu1 %vm141_vm5, %v903_v30 }
0x1226   :  { %1174 = vmatpush.msra.mxu1 %v1756_v1 }
0x1228   :  { %1175 = vmatpush.msra.mxu1 %v1761_v3 }
0x122a   :  { %1176 = vmatpush.msra.mxu1 %v1768_v4 }
0x122c   :  { %1177 = vmatpush.msra.mxu1 %v1775_v9 }
0x12a2   :  { %v923_v33 = vpop.f32.mrf.mxu1 }
0x12a3   :  { %v926_v34 = vadd.f32 %v923_v33, %v748_v32 }
0x12a5   :  { %1451 = vtanh.f32 %v926_v34  ;;  %v1358_v36 = vmul.f32 -1.442695, %v926_v34 }
0x12a7   :  { %1453 = vpow2.f32 %v1358_v36 }
0x12ab   :  { %v1452_v35 = vpop.eup %1451 }
0x12ac   :  { %949 = vrot.lane.b32.xlu0 %v1452_v35, %s1538_s29 }
0x12ad   :  { %v1454_v37 = vpop.eup %1453 }
0x12ae   :  { %v930_v39 = vadd.f32 1.0, %v1454_v37 }
0x12b0   :  { %1455 = vrcp.f32 %v930_v39  ;;  %v942_v45 = vand.u32 2147483648, %v930_v39  ;;  %vm936_vm9 = vweird.f32 %v930_v39  ;;  %v940_v46 = vand.u32 2147483647, %v930_v39 }
0x12b2   :  { %v943_v48 = vor.u32 1.1754944e-38, %v942_v45  ;;  %vm941_vm11 = vcmp.eq.f32.partialorder %v940_v46, 8.507059e+37 }
0x12b6   :  { %v1456_v40 = vpop.eup %1455 }
0x12b7   :  { %v932_v41 = vmul.f32 %v1456_v40, %v930_v39  ;;  %vm937_vm8 = vweird.f32 %v1456_v40 }
0x12b8   :  { %vm938_vm10 = vmor %vm936_vm9, %vm937_vm8 }
0x12b9   :  { %v933_v42 = vsub.f32 1.0, %v932_v41 }
0x12bb   :  { %v934_v43 = vmul.f32 %v1456_v40, %v933_v42 }
0x12bd   :  { %v935_v44 = vadd.f32 %v1456_v40, %v934_v43 }
0x12bf   :  { %v939_v47 = vsel %vm938_vm10, %v1456_v40, %v935_v44 }
0x12c0   :  { %v944_v51 = vsel %vm941_vm11, %v943_v48, %v939_v47 }
0x12c1   :  { %v947_v53 = vmul.f32 %v944_v51, %v893_v26  ;;  %v754_v26 = vadd.f32 %v1798_v15, %v753_v25 }
0x131e   :  { %v950_v50 = vpop.permute.xlu0 %949 }
0x131f   :  { %v952_v52 = vmul.f32 %v950_v50, %v944_v51 }
0x1321   :  { %954 = vrot.lane.b32.xlu1 %v952_v52, %s1539_s30 }
0x1393   :  { %v955_v54 = vpop.permute.xlu1 %954 }
0x1394   :  { %v957_v55 = vadd.f32 %v955_v54, %v947_v53  ;;  %v756_v54 = vpop.f32.mrf.mxu3 }
0x1396   :  { %1457 = vtanh.f32 %v957_v55 }
0x139c   :  { %v1458_v56 = vpop.eup %1457 }
0x139d   :  { %960 = vrot.lane.b32.xlu2 %v1458_v56, %s1538_s29 }
0x13f7   :  { %v961_v57 = vpop.permute.xlu2 %960 }
0x13f8   :  { %v963_v58 = vmul.f32 %v961_v57, %v944_v51 }
0x13fa   :  { %966 = vrot.lane.b32.xlu0 %v963_v58, %s1539_s30 }
0x146c   :  { %v967_v59 = vpop.permute.xlu0 %966 }
0x146d   :  { %1359 = vmatmul.msk.f32.vlgmr.msrb.gmra.mxu2 %vm141_vm5, %v967_v59 }
0x146e   :  { %1238 = vmatpush.msrb.mxu2 %v1756_v1 }
0x1470   :  { %1239 = vmatpush.msrb.mxu2 %v1761_v3 }
0x1472   :  { %1240 = vmatpush.msrb.mxu2 %v1768_v4 }
0x1474   :  { %1241 = vmatpush.msrb.mxu2 %v1775_v9 }
0x14f0   :  { %v987_v63 = vpop.f32.mrf.mxu2 }
0x14f1   :  { %v990_v10 = vadd.f32 %v987_v63, %v751_v61 }
0x14f3   :  { %1459 = vtanh.f32 %v990_v10  ;;  %v1360_v12 = vmul.f32 -1.442695, %v990_v10 }
0x14f5   :  { %1461 = vpow2.f32 %v1360_v12 }
0x14f9   :  { %v1460_v11 = vpop.eup %1459 }
0x14fa   :  { %1013 = vrot.lane.b32.xlu1 %v1460_v11, %s1538_s29 }
0x14fb   :  { %v1462_v13 = vpop.eup %1461 }
0x14fc   :  { %v994_v14 = vadd.f32 1.0, %v1462_v13 }
0x14fe   :  { %1463 = vrcp.f32 %v994_v14  ;;  %v1006_v9 = vand.u32 2147483648, %v994_v14  ;;  %vm1000_vm13 = vweird.f32 %v994_v14  ;;  %v1004_v17 = vand.u32 2147483647, %v994_v14 }
0x1500   :  { %v1007_v0 = vor.u32 1.1754944e-38, %v1006_v9  ;;  %vm1005_vm15 = vcmp.eq.f32.partialorder %v1004_v17, 8.507059e+37 }
0x1504   :  { %v1464_v1 = vpop.eup %1463 }
0x1505   :  { %v996_v3 = vmul.f32 %v1464_v1, %v994_v14  ;;  %vm1001_vm12 = vweird.f32 %v1464_v1 }
0x1506   :  { %vm1002_vm14 = vmor %vm1000_vm13, %vm1001_vm12 }
0x1507   :  { %v997_v7 = vsub.f32 1.0, %v996_v3 }
0x1509   :  { %v998_v4 = vmul.f32 %v1464_v1, %v997_v7  ;;  %v1507_v7 = vld [vmem:[%s1902_s3] ss:$0 sm:$0xff] }
0x150b   :  { %v999_v16 = vadd.f32 %v1464_v1, %v998_v4  ;;  %v126_v4 = vadd.f32 %v1507_v7, %v1743_v38 }
0x150d   :  { %v1003_v18 = vsel %vm1002_vm14, %v1464_v1, %v999_v16  ;;  %v640_v9 = vadd.f32 %v1825_v62, %v126_v4 }
0x150e   :  { %v1008_v8 = vsel %vm1005_vm15, %v1007_v0, %v1003_v18 }
0x150f   :  { %v1011_v19 = vmul.f32 %v1008_v8, %v957_v55  ;;  %v757_v55 = vadd.f32 %v1798_v15, %v756_v54 }
0x156c   :  { %v1014_v2 = vpop.permute.xlu1 %1013 }
0x156d   :  { %v1016_v5 = vmul.f32 %v1014_v2, %v1008_v8 }
0x156f   :  { %1018 = vrot.lane.b32.xlu2 %v1016_v5, %s1539_s30 }
0x15c9   :  { %v1019_v20 = vpop.permute.xlu2 %1018 }
0x15ca   :  { %v1021_v6 = vadd.f32 %v1019_v20, %v1011_v19  ;;  %v1345_v20 = vmul.f32 -1.442695, %v640_v9 }
0x15cc   :  { %1465 = vtanh.f32 %v1021_v6 }
0x15d2   :  { %v1466_v21 = vpop.eup %1465 }
0x15d3   :  { %1024 = vrot.lane.b32.xlu0 %v1466_v21, %s1538_s29 }
0x1645   :  { %v1025_v22 = vpop.permute.xlu0 %1024 }
0x1646   :  { %v1027_v23 = vmul.f32 %v1025_v22, %v1008_v8 }
0x1648   :  { %1030 = vrot.lane.b32.xlu1 %v1027_v23, %s1539_s30 }
0x16ba   :  { %v1031_v24 = vpop.permute.xlu1 %1030 }
0x16bb   :  { %1361 = vmatmul.msk.f32.vlgmr.msrb.gmra.mxu1 %vm141_vm5, %v1031_v24 }
0x1738   :  { %v1051_v27 = vpop.f32.mrf.mxu1 }
0x1739   :  { %v1054_v28 = vadd.f32 %v1051_v27, %v754_v26 }
0x173b   :  { %1467 = vtanh.f32 %v1054_v28  ;;  %v1362_v30 = vmul.f32 -1.442695, %v1054_v28 }
0x173d   :  { %1469 = vpow2.f32 %v1362_v30 }
0x1741   :  { %v1468_v29 = vpop.eup %1467 }
0x1742   :  { %1077 = vrot.lane.b32.xlu2 %v1468_v29, %s1538_s29 }
0x1743   :  { %v1470_v31 = vpop.eup %1469 }
0x1744   :  { %v1058_v32 = vadd.f32 1.0, %v1470_v31 }
0x1746   :  { %1471 = vrcp.f32 %v1058_v32  ;;  %v1070_v39 = vand.u32 2147483648, %v1058_v32  ;;  %vm1064_vm2 = vweird.f32 %v1058_v32  ;;  %v1068_v40 = vand.u32 2147483647, %v1058_v32 }
0x1748   :  { %v1071_v42 = vor.u32 1.1754944e-38, %v1070_v39  ;;  %vm1069_vm4 = vcmp.eq.f32.partialorder %v1068_v40, 8.507059e+37 }
0x174c   :  { %v1472_v33 = vpop.eup %1471 }
0x174d   :  { %v1060_v34 = vmul.f32 %v1472_v33, %v1058_v32  ;;  %vm1065_vm1 = vweird.f32 %v1472_v33 }
0x174e   :  { %vm1066_vm3 = vmor %vm1064_vm2, %vm1065_vm1 }
0x174f   :  { %v1061_v35 = vsub.f32 1.0, %v1060_v34 }
0x1751   :  { %v1062_v36 = vmul.f32 %v1472_v33, %v1061_v35 }
0x1753   :  { %v1063_v37 = vadd.f32 %v1472_v33, %v1062_v36  ;;  %v759_v36 = vpop.f32.mrf.mxu3 }
0x1755   :  { %v1067_v41 = vsel %vm1066_vm3, %v1472_v33, %v1063_v37  ;;  %v760_v37 = vadd.f32 %v1798_v15, %v759_v36 }
0x1756   :  { %v1072_v44 = vsel %vm1069_vm4, %v1071_v42, %v1067_v41 }
0x1757   :  { %v1075_v46 = vmul.f32 %v1072_v44, %v1021_v6 }
0x179c   :  { %v1078_v43 = vpop.permute.xlu2 %1077 }
0x179d   :  { %v1080_v45 = vmul.f32 %v1078_v43, %v1072_v44 }
0x179f   :  { %1082 = vrot.lane.b32.xlu0 %v1080_v45, %s1539_s30 }
0x1811   :  { %v1083_v47 = vpop.permute.xlu0 %1082 }
0x1812   :  { %v1085_v48 = vadd.f32 %v1083_v47, %v1075_v46 }
0x1814   :  { %1473 = vtanh.f32 %v1085_v48 }
0x181a   :  { %v1474_v50 = vpop.eup %1473 }
0x181b   :  { %1088 = vrot.lane.b32.xlu1 %v1474_v50, %s1538_s29 }
0x188d   :  { %v1089_v51 = vpop.permute.xlu1 %1088 }
0x188e   :  { %v1091_v52 = vmul.f32 %v1089_v51, %v1072_v44 }
0x1890   :  { %1094 = vrot.lane.b32.xlu2 %v1091_v52, %s1539_s30 }
0x18ea   :  { %v1095_v53 = vpop.permute.xlu2 %1094 }
0x18eb   :  { %1363 = vmatmul.msk.f32.vlgmr.msra.gmra.mxu2 %vm141_vm5, %v1095_v53 }
0x196e   :  { %v1115_v56 = vpop.f32.mrf.mxu2 }
0x196f   :  { %v1118_v57 = vadd.f32 %v1115_v56, %v757_v55 }
0x1971   :  { %1475 = vtanh.f32 %v1118_v57  ;;  %v1364_v59 = vmul.f32 -1.442695, %v1118_v57 }
0x1973   :  { %1477 = vpow2.f32 %v1364_v59 }
0x1977   :  { %v1476_v58 = vpop.eup %1475 }
0x1978   :  { %1141 = vrot.lane.b32.xlu0 %v1476_v58, %s1538_s29 }
0x1979   :  { %v1478_v60 = vpop.eup %1477 }
0x197a   :  { %v1122_v61 = vadd.f32 1.0, %v1478_v60 }
0x197c   :  { %1479 = vrcp.f32 %v1122_v61  ;;  %v1134_v14 = vand.u32 2147483648, %v1122_v61  ;;  %vm1128_vm7 = vweird.f32 %v1122_v61  ;;  %v1132_v1 = vand.u32 2147483647, %v1122_v61 }
0x197d   :  { %1481 = vtanh.f32 %v640_v9 }
0x197e   :  { %v1135_v16 = vor.u32 1.1754944e-38, %v1134_v14  ;;  %vm1133_vm8 = vcmp.eq.f32.partialorder %v1132_v1, 8.507059e+37 }
0x1982   :  { %v1480_v63 = vpop.eup %1479 }
0x1983   :  { %v1124_v10 = vmul.f32 %v1480_v63, %v1122_v61  ;;  %vm1129_vm6 = vweird.f32 %v1480_v63  ;;  %v1482_v2 = vpop.eup %1481 }
0x1984   :  { %vm1130_vm0 = vmor %vm1128_vm7, %vm1129_vm6 }
0x1985   :  { %v1125_v11 = vsub.f32 1.0, %v1124_v10 }
0x1987   :  { %v1126_v12 = vmul.f32 %v1480_v63, %v1125_v11 }
0x1989   :  { %v1127_v13 = vadd.f32 %v1480_v63, %v1126_v12 }
0x198b   :  { %v1131_v3 = vsel %vm1130_vm0, %v1480_v63, %v1127_v13 }
0x198c   :  { %v1136_v18 = vsel %vm1133_vm8, %v1135_v16, %v1131_v3 }
0x198d   :  { %v1139_v8 = vmul.f32 %v1136_v18, %v1085_v48 }
0x19ea   :  { %v1142_v17 = vpop.permute.xlu0 %1141 }
0x19eb   :  { %v1144_v0 = vmul.f32 %v1142_v17, %v1136_v18 }
0x19ed   :  { %1146 = vrot.lane.b32.xlu1 %v1144_v0, %s1539_s30 }
0x19f5   :  { %663 = vrot.lane.b32.xlu1 %v1482_v2, %s1538_s29 }
0x1a5f   :  { %v1147_v5 = vpop.permute.xlu1 %1146 }
0x1a60   :  { %v1868_v19 = vadd.f32 %v1147_v5, %v1139_v8 }
0x1a62   :  { %1483 = vtanh.f32 %v1868_v19 }
0x1a63   :  { %1485 = vpow2.f32 %v1345_v20 }
0x1a67   :  { %v664_v32 = vpop.permute.xlu1 %663 }
0x1a68   :  { %v1484_v38 = vpop.eup %1483 }
0x1a69   :  { %1152 = vrot.lane.b32.xlu2 %v1484_v38, %s1538_s29  ;;  %v1486_v62 = vpop.eup %1485 }
0x1a6a   :  { %v644_v6 = vadd.f32 1.0, %v1486_v62 }
0x1a6c   :  { %1487 = vrcp.f32 %v644_v6  ;;  %v656_v28 = vand.u32 2147483648, %v644_v6  ;;  %vm650_vm10 = vweird.f32 %v644_v6  ;;  %v654_v29 = vand.u32 2147483647, %v644_v6 }
0x1a6e   :  { %v657_v31 = vor.u32 1.1754944e-38, %v656_v28  ;;  %vm655_vm12 = vcmp.eq.f32.partialorder %v654_v29, 8.507059e+37 }
0x1a72   :  { %v1488_v21 = vpop.eup %1487 }
0x1a73   :  { %v646_v22 = vmul.f32 %v1488_v21, %v644_v6  ;;  %vm651_vm9 = vweird.f32 %v1488_v21 }
0x1a74   :  { %vm652_vm11 = vmor %vm650_vm10, %vm651_vm9 }
0x1a75   :  { %v647_v23 = vsub.f32 1.0, %v646_v22 }
0x1a77   :  { %v648_v24 = vmul.f32 %v1488_v21, %v647_v23 }
0x1a79   :  { %v649_v26 = vadd.f32 %v1488_v21, %v648_v24 }
0x1a7b   :  { %v653_v30 = vsel %vm652_vm11, %v1488_v21, %v649_v26 }
0x1a7c   :  { %v658_v33 = vsel %vm655_vm12, %v657_v31, %v653_v30  ;;  %v1287_v31 = vld [vmem:[#allocation4 + $0x18] sm:$0xff] }
0x1a7d   :  { %v666_v34 = vmul.f32 %v664_v32, %v658_v33  ;;  %v661_v42 = vmul.f32 %v658_v33, %v1806_v49  ;;  %v1286_v32 = vld [vmem:[#allocation4 + $0x10] sm:$0xff]  ;;  %1309 = vmatpush.msrb.mxu1 %v1287_v31 }
0x1a7f   :  { %1310 = vmatpush.msrb.mxu1 %v1286_v32 }
0x1ac3   :  { %v1153_v25 = vpop.permute.xlu2 %1152 }
0x1ac4   :  { %v1155_v27 = vmul.f32 %v1153_v25, %v1136_v18 }
0x1ac6   :  { %1158 = vrot.lane.b32.xlu0 %v1155_v27, %s1539_s30 }
0x1ace   :  { %668 = vrot.lane.b32.xlu0 %v666_v34, %s1539_s30  ;;  %v1284_v34 = vld [vmem:[#allocation4] sm:$0xff] }
0x1b38   :  { %v1159_v35 = vpop.permute.xlu0 %1158 }
0x1b39   :  { %1365 = vmatmul.msk.f32.vlgmr.msra.gmra.mxu1 %vm141_vm5, %v1159_v35 }
0x1b40   :  { %v669_v41 = vpop.permute.xlu0 %668 }
0x1b41   :  { %v671_v43 = vadd.f32 %v669_v41, %v661_v42 }
0x1bb6   :  { %v1179_v39 = vpop.f32.mrf.mxu1 }
0x1bb7   :  { %v1182_v40 = vadd.f32 %v1179_v39, %v760_v37  ;;  %v1378_v39 = vld [vmem:[%s1907_s8] ss:$0 sm:$0xff] }
0x1bb9   :  { %1489 = vtanh.f32 %v1182_v40  ;;  %v1366_v46 = vmul.f32 -1.442695, %v1182_v40 }
0x1bba   :  { %1491 = vtanh.f32 %v671_v43 }
0x1bbb   :  { %1493 = vpow2.f32 %v1366_v46 }
0x1bbf   :  { %v1490_v44 = vpop.eup %1489 }
0x1bc0   :  { %1205 = vrot.lane.b32.xlu2 %v1490_v44, %s1538_s29  ;;  %v1492_v45 = vpop.eup %1491 }
0x1bc1   :  { %v1494_v47 = vpop.eup %1493 }
0x1bc2   :  { %v1186_v48 = vadd.f32 1.0, %v1494_v47 }
0x1bc4   :  { %1495 = vrcp.f32 %v1186_v48  ;;  %v1198_v49 = vand.u32 2147483648, %v1186_v48  ;;  %vm1192_vm14 = vweird.f32 %v1186_v48  ;;  %v1196_v55 = vand.u32 2147483647, %v1186_v48 }
0x1bc6   :  { %v1199_v57 = vor.u32 1.1754944e-38, %v1198_v49  ;;  %vm1197_vm1 = vcmp.eq.f32.partialorder %v1196_v55, 8.507059e+37 }
0x1bc8   :  { %674 = vrot.lane.b32.xlu2 %v1492_v45, %s1538_s29 }
0x1bca   :  { %v1496_v50 = vpop.eup %1495 }
0x1bcb   :  { %v1188_v51 = vmul.f32 %v1496_v50, %v1186_v48  ;;  %vm1193_vm13 = vweird.f32 %v1496_v50 }
0x1bcc   :  { %vm1194_vm15 = vmor %vm1192_vm14, %vm1193_vm13 }
0x1bcd   :  { %v1189_v52 = vsub.f32 1.0, %v1188_v51 }
0x1bcf   :  { %v1190_v53 = vmul.f32 %v1496_v50, %v1189_v52 }
0x1bd1   :  { %v1191_v54 = vadd.f32 %v1496_v50, %v1190_v53 }
0x1bd3   :  { %v1195_v56 = vsel %vm1194_vm15, %v1496_v50, %v1191_v54 }
0x1bd4   :  { %v1200_v59 = vsel %vm1197_vm1, %v1199_v57, %v1195_v56 }
0x1bd5   :  { %v1203_v10 = vmul.f32 %v1200_v59, %v1868_v19 }
0x1c1a   :  { %v1206_v58 = vpop.permute.xlu2 %1205 }
0x1c1b   :  { %v1208_v60 = vmul.f32 %v1206_v58, %v1200_v59 }
0x1c1d   :  { %1210 = vrot.lane.b32.xlu1 %v1208_v60, %s1539_s30 }
0x1c22   :  { %v675_v61 = vpop.permute.xlu2 %674 }
0x1c23   :  { %v677_v63 = vmul.f32 %v675_v61, %v658_v33  ;;  %v1285_v33 = vld [vmem:[#allocation4 + $0x8] sm:$0xff] }
0x1c24   :  { %1311 = vmatpush.msrb.mxu1 %v1285_v33 }
0x1c25   :  { %679 = vrot.lane.b32.xlu1 %v677_v63, %s1539_s30 }
0x1c26   :  { %1312 = vmatpush.msrb.mxu1 %v1284_v34 }
0x1c8f   :  { %v1211_v11 = vpop.permute.xlu1 %1210 }
0x1c90   :  { %v1213_v12 = vadd.f32 %v1211_v11, %v1203_v10 }
0x1c92   :  { %1497 = vtanh.f32 %v1213_v12 }
0x1c97   :  { %v680_v13 = vpop.permute.xlu1 %679 }
0x1c98   :  { %v1498_v14 = vpop.eup %1497  ;;  %683 = vst.msk [vmem:[#allocation3 + $0x38] sm:$0xff] %vm141_vm5, %v680_v13 }
0x1c99   :  { %1216 = vrot.lane.b32.xlu0 %v1498_v14, %s1538_s29 }
0x1c9f   :  { %v691_v1 = vld [vmem:[#allocation3 + $0x38] sm:$0xff] }
0x1ca0   :  { %1353 = vmatmul.msk.f32.gmra.mxu3 %vm141_vm5, %v691_v1 }
0x1d0b   :  { %v1217_v3 = vpop.permute.xlu0 %1216 }
0x1d0c   :  { %v1219_v7 = vmul.f32 %v1217_v3, %v1200_v59 }
0x1d0e   :  { %1222 = vrot.lane.b32.xlu2 %v1219_v7, %s1539_s30 }
0x1d23   :  { %v762_v16 = vpop.f32.mrf.mxu3 }
0x1d24   :  { %v763_v9 = vadd.f32 %v1798_v15, %v762_v16 }
0x1d68   :  { %v1223_v4 = vpop.permute.xlu2 %1222 }
0x1d69   :  { %1367 = vmatmul.msk.f32.vlgmr.msrb.gmra.mxu2 %vm141_vm5, %v1223_v4 }
0x1dec   :  { %v1243_v17 = vpop.f32.mrf.mxu2 }
0x1ded   :  { %v1246_v18 = vadd.f32 %v1243_v17, %v763_v9 }
0x1def   :  { %1499 = vtanh.f32 %v1246_v18  ;;  %v1368_v2 = vmul.f32 -1.442695, %v1246_v18 }
0x1df1   :  { %1501 = vpow2.f32 %v1368_v2 }
0x1df5   :  { %v1500_v0 = vpop.eup %1499 }
0x1df6   :  { %1269 = vrot.lane.b32.xlu0 %v1500_v0, %s1538_s29 }
0x1df7   :  { %v1502_v8 = vpop.eup %1501 }
0x1df8   :  { %v1250_v5 = vadd.f32 1.0, %v1502_v8 }
0x1dfa   :  { %1503 = vrcp.f32 %v1250_v5  ;;  %v1262_v21 = vand.u32 2147483648, %v1250_v5  ;;  %vm1256_vm3 = vweird.f32 %v1250_v5  ;;  %v1260_v15 = vand.u32 2147483647, %v1250_v5 }
0x1dfc   :  { %v1263_v23 = vor.u32 1.1754944e-38, %v1262_v21  ;;  %vm1261_vm6 = vcmp.eq.f32.partialorder %v1260_v15, 8.507059e+37 }
0x1e00   :  { %v1504_v19 = vpop.eup %1503 }
0x1e01   :  { %v1252_v38 = vmul.f32 %v1504_v19, %v1250_v5  ;;  %vm1257_vm2 = vweird.f32 %v1504_v19 }
0x1e02   :  { %vm1258_vm4 = vmor %vm1256_vm3, %vm1257_vm2 }
0x1e03   :  { %v1253_v20 = vsub.f32 1.0, %v1252_v38 }
0x1e05   :  { %v1254_v62 = vmul.f32 %v1504_v19, %v1253_v20 }
0x1e07   :  { %v1255_v6 = vadd.f32 %v1504_v19, %v1254_v62 }
0x1e09   :  { %v1259_v22 = vsel %vm1258_vm4, %v1504_v19, %v1255_v6 }
0x1e0a   :  { %v1264_v25 = vsel %vm1261_vm6, %v1263_v23, %v1259_v22 }
0x1e0b   :  { %v1267_v27 = vmul.f32 %v1264_v25, %v1213_v12 }
0x1e68   :  { %v1270_v24 = vpop.permute.xlu0 %1269 }
0x1e69   :  { %v1272_v26 = vmul.f32 %v1270_v24, %v1264_v25 }
0x1e6b   :  { %1274 = vrot.lane.b32.xlu1 %v1272_v26, %s1539_s30 }
0x1edd   :  { %v1275_v28 = vpop.permute.xlu1 %1274 }
0x1ede   :  { %v1277_v29 = vadd.f32 %v1275_v28, %v1267_v27 }
0x1ee0   :  { %1505 = vtanh.f32 %v1277_v29 }
0x1ee6   :  { %v1506_v30 = vpop.eup %1505 }
0x1ee7   :  { %1280 = vrot.lane.b32.xlu2 %v1506_v30, %s1538_s29 }
0x1f41   :  { %v1281_v35 = vpop.permute.xlu2 %1280 }
0x1f42   :  { %v1283_v36 = vmul.f32 %v1281_v35, %v1264_v25 }
0x1f44   :  { %1293 = vrot.lane.b32.xlu0 %v1283_v36, %s1539_s30 }
0x1fb6   :  { %v1294_v37 = vpop.permute.xlu0 %1293 }
0x1fb7   :  { %1369 = vmatmul.msk.f32.vlgmr.msrb.gmra.mxu1 %vm141_vm5, %v1294_v37 }
0x2034   :  { %v1314_v40 = vpop.f32.mrf.mxu1 }
0x2035   :  { %v1315_v41 = vadd.f32 %v1378_v39, %v1314_v40 }
0x2037   :  { %1317 = vst [vmem:[%s1908_s9] sm:$0xff] %v1315_v41 }
0x2038   :  { %1322 = vsyncpa [#allocation5], 1 }

</bundles_post_ra>
